<compile_context>
chip_gen: v7x
topology: tpu7x:2x2x1
jax: 0.10.0
libtpu: 0.0.40
codegen_flags: <defaults>
</compile_context>

<pallas_src>
import numpy as np

import jax
import jax.numpy as jnp
from jax import lax
from jax.experimental import pallas as pl
from jax.experimental.pallas import tpu as pltpu


# -----------------------------------------------------------------------------
# Network configuration (concrete EvolvedNetwork instance)
# -----------------------------------------------------------------------------
N, C_IN, H, W = 2, 4, 16, 16
C_MID = 8
NUM_CLASSES = 10
LANES = W * C_MID          # 128: internal lane-dense slab width
K0 = W * C_IN              # 64:  input slab width
R = H * N                  # 32:  slab rows (h-major, n-minor)


# -----------------------------------------------------------------------------
# Host-side (one-time) weight packing into banded / lane-dense layouts
# -----------------------------------------------------------------------------
def conv3x3_banded(w):
    """(3, 3, cin, cout) conv weight -> (3, W*cin, W*cout) block-banded matrices.

    B[dh][(wo+dw-1)*cin:(wo+dw)*cin, wo*cout:(wo+1)*cout] = w[dh, dw];
    out-of-range W taps are omitted, implementing zero padding along W.
    """
    kh, kw, cin, cout = w.shape
    B = np.zeros((kh, W * cin, W * cout), np.float32)
    for dh in range(kh):
        for dw in range(kw):
            for wo in range(W):
                wi = wo + dw - 1
                if 0 <= wi < W:
                    B[dh, wi * cin:(wi + 1) * cin, wo * cout:(wo + 1) * cout] = w[dh, dw]
    return B


def conv1x1_blockdiag(w):
    """(1, 1, cin, cout) conv weight -> (W*cin, W*cout) block-diagonal matrix."""
    _, _, cin, cout = w.shape
    B = np.zeros((W * cin, W * cout), np.float32)
    for wo in range(W):
        B[wo * cin:(wo + 1) * cin, wo * cout:(wo + 1) * cout] = w[0, 0]
    return B


# -----------------------------------------------------------------------------
# Fused Pallas kernel: conv0+proj -> conv1 -> skip-sum -> fc  (whole batch)
# -----------------------------------------------------------------------------
def _fused_evolved_kernel(x_ref, w0_ref, w1_ref, w3_ref, bias_ref, o_ref):
    f32 = jnp.float32
    x = x_ref[...]                         # (R, 64) batched input slab
    brows = bias_ref[...]                  # (4, 128) bias rows
    b0 = brows[0:1, :]
    bp = brows[1:2, :]
    b1 = brows[2:3, :]
    b3 = brows[3:4, :]

    # Shift-by-N 0/1 matrices for the dh = 0 / 2 conv taps.  Rows are ordered
    # (h-major, n-minor), so a shift of exactly N rows moves h by +/-1 within
    # the same image and zero-pads at the H borders.
    r = lax.broadcasted_iota(jnp.int32, (R, R), 0)
    c = lax.broadcasted_iota(jnp.int32, (R, R), 1)
    sdown = (r == c + N).astype(f32)       # picks row r-N (h-1); h=0 rows -> 0
    sup = (c == r + N).astype(f32)         # picks row r+N (h+1); h=H-1 rows -> 0

    def band_combine(p0, p1, p2, brow):
        # out[h] = in[h-1] @ B0 + in[h] @ B1 + in[h+1] @ B2 + bias
        down = jnp.dot(sdown, p0, preferred_element_type=f32)
        up = jnp.dot(sup, p2, preferred_element_type=f32)
        return p1 + down + up + brow

    # ---- conv0 (3 dh bands) + proj (1x1) fused into a single (R,64)@(64,512) ----
    P = jnp.dot(x, w0_ref[...], preferred_element_type=f32)        # (R, 512)
    a0 = jnp.maximum(
        band_combine(P[:, 0:LANES], P[:, LANES:2 * LANES],
                     P[:, 2 * LANES:3 * LANES], b0), 0.0)          # conv0+ReLU (R,128)
    proj = P[:, 3 * LANES:4 * LANES] + bp                          # proj (no ReLU)

    # ---- conv1 (3 dh bands) fused into a single (R,128)@(128,384) ----
    Q = jnp.dot(a0, w1_ref[...], preferred_element_type=f32)       # (R, 384)
    a1 = jnp.maximum(
        band_combine(Q[:, 0:LANES], Q[:, LANES:2 * LANES],
                     Q[:, 2 * LANES:3 * LANES], b1), 0.0)          # conv1+ReLU (R,128)

    # ---- skip connection: torch.stack([conv1, proj]).sum(0) ----
    s = a1 + proj                                                  # (R, 128)

    # ---- fc: Flatten (NCHW order baked into w3_ref) + Linear, padded to 128 ----
    acc = jnp.zeros((N, LANES), f32)
    for h in range(H):
        acc = acc + jnp.dot(s[h * N:(h + 1) * N, :], w3_ref[h],
                            preferred_element_type=f32)
    o_ref[...] = acc + b3


def build_fused_forward(params):
    """Pack parameters once (host-side) and return a jitted fused forward fn."""
    w0, b0, w1, b1, wp, bp, w3, b3 = (np.asarray(p) for p in params)

    B0 = conv3x3_banded(w0)                                    # (3, 64, 128)
    B1 = conv3x3_banded(w1)                                    # (3, 128, 128)
    Bp = conv1x1_blockdiag(wp)                                 # (64, 128)
    W0all = np.concatenate([B0[0], B0[1], B0[2], Bp], axis=1)  # (64, 512)
    W1all = np.concatenate([B1[0], B1[1], B1[2]], axis=1)      # (128, 384)

    # fc weight permuted to the (h, w, c) slab flatten order, output padded to 128.
    w3r = w3.reshape(C_MID, H, W, NUM_CLASSES).transpose(1, 2, 0, 3)
    W3p = np.zeros((H, W * C_MID, LANES), np.float32)
    W3p[:, :, :NUM_CLASSES] = w3r.reshape(H, W * C_MID, NUM_CLASSES)

    brows = np.zeros((4, LANES), np.float32)
    brows[0] = np.tile(b0, W)                                  # conv0 bias row
    brows[1] = np.tile(bp, W)                                  # proj bias row
    brows[2] = np.tile(b1, W)                                  # conv1 bias row
    brows[3, :NUM_CLASSES] = b3                                # fc bias row (padded)

    packed = tuple(jnp.asarray(a) for a in (W0all, W1all, W3p, brows))

    call = pl.pallas_call(
        _fused_evolved_kernel,
        out_shape=jax.ShapeDtypeStruct((N, LANES), jnp.float32),
        grid=(1,),
        in_specs=[
            pl.BlockSpec((R, K0), lambda i: (0, 0)),               # x slab (32, 64)
            pl.BlockSpec((K0, 4 * LANES), lambda i: (0, 0)),       # conv0 bands | proj
            pl.BlockSpec((LANES, 3 * LANES), lambda i: (0, 0)),    # conv1 bands
            pl.BlockSpec((H, LANES, LANES), lambda i: (0, 0, 0)),  # fc weight (permuted)
            pl.BlockSpec((4, LANES), lambda i: (0, 0)),            # bias rows
        ],
        out_specs=pl.BlockSpec((N, LANES), lambda i: (0, 0)),
        compiler_params=pltpu.CompilerParams(
            dimension_semantics=("arbitrary",)),
    )

    @jax.jit
    def forward(x_nchw):
        # One-time layout plumbing: NCHW -> lane-dense (H*N, W*C) slab, h-major.
        x_slab = jnp.transpose(x_nchw, (2, 0, 3, 1)).reshape(R, K0)
        out = call(x_slab, *packed)
        return out[:, :NUM_CLASSES]

    return forward


# -----------------------------------------------------------------------------
# Plain-JAX reference mirroring the PyTorch EvolvedNetwork DAG executor
# (memoized recursive _process_forward_pass; stack+sum for multi-input layers)
# -----------------------------------------------------------------------------
class EvolvedNetworkRef:
    def __init__(self, layer_fns, layers_connections, output_layer_idx):
        self.layer_fns = layer_fns
        self.layers_connections = layers_connections
        self.output_layer_idx = output_layer_idx

    def _process_forward_pass(self, x, layer_id, input_ids, cache):
        assert len(input_ids) > 0
        layer_inputs = []
        for i in input_ids:
            if i == -1:
                t = x
            elif (i, layer_id) in cache:
                t = cache[(i, layer_id)]
            else:
                t = self._process_forward_pass(x, i, self.layers_connections[i], cache)
                cache[(i, layer_id)] = t
            layer_inputs.append(t)
        if len(layer_inputs) > 1:
            final_input = jnp.stack(layer_inputs, axis=0).sum(axis=0)
        else:
            final_input = layer_inputs[0]
        return self.layer_fns[layer_id](final_input)

    def forward(self, x):
        result = []
        for out_id in self.output_layer_idx:
            result.append(self._process_forward_pass(
                x, out_id, self.layers_connections[out_id], cache={}))
        return tuple(result) if len(result) > 1 else result[0]


def ref_conv2d(x_nchw, w_hwio, b, relu):
    y = lax.conv_general_dilated(
        x_nchw, w_hwio, window_strides=(1, 1), padding="SAME",
        dimension_numbers=("NCHW", "HWIO", "NCHW"),
        precision=lax.Precision.HIGHEST)
    y = y + b.reshape(1, -1, 1, 1)
    return jnp.maximum(y, 0.0) if relu else y


def ref_fc(x_nchw, w, b):
    flat = x_nchw.reshape(x_nchw.shape[0], -1)   # NCHW flatten order (like torch)
    return jnp.dot(flat, w, precision=lax.Precision.HIGHEST) + b


# -----------------------------------------------------------------------------
# Main
# -----------------------------------------------------------------------------
if __name__ == "__main__":
    key = jax.random.PRNGKey(0)
    kx, k0w, k0b, k1w, k1b, k2w, k2b, k3w, k3b = jax.random.split(key, 9)

    # Deterministic synthetic parameters (shapes follow the evolved layers above).
    w0 = 0.1 * jax.random.normal(k0w, (3, 3, C_IN, C_MID), jnp.float32)
    b0 = 0.1 * jax.random.normal(k0b, (C_MID,), jnp.float32)
    w1 = 0.1 * jax.random.normal(k1w, (3, 3, C_MID, C_MID), jnp.float32)
    b1 = 0.1 * jax.random.normal(k1b, (C_MID,), jnp.float32)
    wp = 0.1 * jax.random.normal(k2w, (1, 1, C_IN, C_MID), jnp.float32)
    bp = 0.1 * jax.random.normal(k2b, (C_MID,), jnp.float32)
    w3 = 0.05 * jax.random.normal(k3w, (C_MID * H * W, NUM_CLASSES), jnp.float32)
    b3 = 0.05 * jax.random.normal(k3b, (NUM_CLASSES,), jnp.float32)

    x = jax.random.normal(kx, (N, C_IN, H, W), jnp.float32)   # NCHW like PyTorch

    # --- fused single-kernel Pallas forward ---
    forward = build_fused_forward((w0, b0, w1, b1, wp, bp, w3, b3))
    out = jax.block_until_ready(forward(x))
    assert out.shape == (N, NUM_CLASSES), out.shape

    # --- plain-JAX reference (generic memoized DAG executor, NCHW) ---
    layer_fns = {
        0: lambda t: ref_conv2d(t, w0, b0, relu=True),    # "conv0"
        1: lambda t: ref_conv2d(t, w1, b1, relu=True),    # "conv1"
        2: lambda t: ref_conv2d(t, wp, bp, relu=False),   # "proj"
        3: lambda t: ref_fc(t, w3, b3),                   # "fc"
    }
    layers_connections = {0: [-1], 1: [0], 2: [-1], 3: [1, 2]}
    ref_net = EvolvedNetworkRef(layer_fns, layers_connections, output_layer_idx=[3])
    out_ref = jax.block_until_ready(ref_net.forward(x))

    if not jnp.allclose(out, out_ref, atol=5e-2, rtol=5e-2):
        max_err = float(jnp.max(jnp.abs(out - out_ref)))
        raise AssertionError(f"Pallas output mismatch vs reference, max abs err = {max_err}")

    print("KERNEL_OK")
</pallas_src>

<mosaic_0001>
module attributes {stable_mosaic.version = 11 : i64} {
  func.func @_fused_evolved_kernel(%arg0: i32, %arg1: memref<32x64xf32, #tpu.memory_space<vmem>>, %arg2: memref<64x512xf32, #tpu.memory_space<vmem>>, %arg3: memref<128x384xf32, #tpu.memory_space<vmem>>, %arg4: memref<16x128x128xf32, #tpu.memory_space<vmem>>, %arg5: memref<4x128xf32, #tpu.memory_space<vmem>>, %arg6: memref<2x128xf32, #tpu.memory_space<vmem>>) attributes {dimension_semantics = [#tpu.dimension_semantics<arbitrary>], iteration_bounds = array<i64: 1>, scalar_prefetch = 0 : i64, scratch_operands = 0 : i64, tpu.core_type = #tpu.core_type<tc>, window_params = [{pipeline_mode = #tpu.pipeline_mode<synchronous>, transform_indices = @transform_0, window_bounds = array<i64: 32, 64>}, {pipeline_mode = #tpu.pipeline_mode<synchronous>, transform_indices = @transform_1, window_bounds = array<i64: 64, 512>}, {pipeline_mode = #tpu.pipeline_mode<synchronous>, transform_indices = @transform_2, window_bounds = array<i64: 128, 384>}, {pipeline_mode = #tpu.pipeline_mode<synchronous>, transform_indices = @transform_3, window_bounds = array<i64: 16, 128, 128>}, {pipeline_mode = #tpu.pipeline_mode<synchronous>, transform_indices = @transform_4, window_bounds = array<i64: 4, 128>}, {pipeline_mode = #tpu.pipeline_mode<synchronous>, transform_indices = @transform_5, window_bounds = array<i64: 2, 128>}]} {
    %c0 = arith.constant 0 : index
    %c0_0 = arith.constant 0 : index
    %0 = vector.load %arg1[%c0, %c0_0] : memref<32x64xf32, #tpu.memory_space<vmem>>, vector<32x64xf32>
    %c0_1 = arith.constant 0 : index
    %c0_2 = arith.constant 0 : index
    %1 = vector.load %arg5[%c0_1, %c0_2] : memref<4x128xf32, #tpu.memory_space<vmem>>, vector<4x128xf32>
    %2 = vector.extract_strided_slice %1 {offsets = [0, 0], sizes = [1, 128], strides = [1, 1]} : vector<4x128xf32> to vector<1x128xf32>
    %3 = vector.extract_strided_slice %1 {offsets = [1, 0], sizes = [1, 128], strides = [1, 1]} : vector<4x128xf32> to vector<1x128xf32>
    %4 = vector.extract_strided_slice %1 {offsets = [2, 0], sizes = [1, 128], strides = [1, 1]} : vector<4x128xf32> to vector<1x128xf32>
    %5 = vector.extract_strided_slice %1 {offsets = [3, 0], sizes = [1, 128], strides = [1, 1]} : vector<4x128xf32> to vector<1x128xf32>
    %6 = tpu.iota {dimensions = array<i32: 0>} : vector<32x32xi32>
    %7 = tpu.iota {dimensions = array<i32: 1>} : vector<32x32xi32>
    %c2_i32 = arith.constant 2 : i32
    %8 = vector.broadcast %c2_i32 : i32 to vector<32x32xi32>
    %9 = arith.addi %7, %8 : vector<32x32xi32>
    %10 = arith.cmpi eq, %6, %9 : vector<32x32xi32>
    %11 = arith.extui %10 : vector<32x32xi1> to vector<32x32xi32>
    %12 = arith.sitofp %11 : vector<32x32xi32> to vector<32x32xf32>
    %c2_i32_3 = arith.constant 2 : i32
    %13 = vector.broadcast %c2_i32_3 : i32 to vector<32x32xi32>
    %14 = arith.addi %6, %13 : vector<32x32xi32>
    %15 = arith.cmpi eq, %7, %14 : vector<32x32xi32>
    %16 = arith.extui %15 : vector<32x32xi1> to vector<32x32xi32>
    %17 = arith.sitofp %16 : vector<32x32xi32> to vector<32x32xf32>
    %c0_4 = arith.constant 0 : index
    %c0_5 = arith.constant 0 : index
    %18 = vector.load %arg2[%c0_4, %c0_5] : memref<64x512xf32, #tpu.memory_space<vmem>>, vector<64x512xf32>
    %cst = arith.constant dense<0.000000e+00> : vector<32x512xf32>
    %19 = tpu.matmul %0, %18, %cst {dimension_numbers = #tpu.dot_dimension_numbers<[1], [0], [0], [1], [0, 0, 1, 1], [], []>} : vector<32x64xf32>, vector<64x512xf32>, vector<32x512xf32> -> vector<32x512xf32>
    %20 = vector.extract_strided_slice %19 {offsets = [0, 0], sizes = [32, 128], strides = [1, 1]} : vector<32x512xf32> to vector<32x128xf32>
    %21 = vector.extract_strided_slice %19 {offsets = [0, 128], sizes = [32, 128], strides = [1, 1]} : vector<32x512xf32> to vector<32x128xf32>
    %22 = vector.extract_strided_slice %19 {offsets = [0, 256], sizes = [32, 128], strides = [1, 1]} : vector<32x512xf32> to vector<32x128xf32>
    %cst_6 = arith.constant dense<0.000000e+00> : vector<32x128xf32>
    %23 = tpu.matmul %12, %20, %cst_6 {dimension_numbers = #tpu.dot_dimension_numbers<[1], [0], [0], [1], [0, 0, 1, 1], [], []>} : vector<32x32xf32>, vector<32x128xf32>, vector<32x128xf32> -> vector<32x128xf32>
    %cst_7 = arith.constant dense<0.000000e+00> : vector<32x128xf32>
    %24 = tpu.matmul %17, %22, %cst_7 {dimension_numbers = #tpu.dot_dimension_numbers<[1], [0], [0], [1], [0, 0, 1, 1], [], []>} : vector<32x32xf32>, vector<32x128xf32>, vector<32x128xf32> -> vector<32x128xf32>
    %25 = arith.addf %21, %23 : vector<32x128xf32>
    %26 = arith.addf %25, %24 : vector<32x128xf32>
    %27 = vector.broadcast %2 : vector<1x128xf32> to vector<32x128xf32>
    %28 = arith.addf %26, %27 : vector<32x128xf32>
    %cst_8 = arith.constant 0.000000e+00 : f32
    %29 = vector.broadcast %cst_8 : f32 to vector<32x128xf32>
    %30 = arith.maximumf %28, %29 : vector<32x128xf32>
    %31 = vector.extract_strided_slice %19 {offsets = [0, 384], sizes = [32, 128], strides = [1, 1]} : vector<32x512xf32> to vector<32x128xf32>
    %32 = vector.broadcast %3 : vector<1x128xf32> to vector<32x128xf32>
    %33 = arith.addf %31, %32 : vector<32x128xf32>
    %c0_9 = arith.constant 0 : index
    %c0_10 = arith.constant 0 : index
    %34 = vector.load %arg3[%c0_9, %c0_10] : memref<128x384xf32, #tpu.memory_space<vmem>>, vector<128x384xf32>
    %cst_11 = arith.constant dense<0.000000e+00> : vector<32x384xf32>
    %35 = tpu.matmul %30, %34, %cst_11 {dimension_numbers = #tpu.dot_dimension_numbers<[1], [0], [0], [1], [0, 0, 1, 1], [], []>} : vector<32x128xf32>, vector<128x384xf32>, vector<32x384xf32> -> vector<32x384xf32>
    %36 = vector.extract_strided_slice %35 {offsets = [0, 0], sizes = [32, 128], strides = [1, 1]} : vector<32x384xf32> to vector<32x128xf32>
    %37 = vector.extract_strided_slice %35 {offsets = [0, 128], sizes = [32, 128], strides = [1, 1]} : vector<32x384xf32> to vector<32x128xf32>
    %38 = vector.extract_strided_slice %35 {offsets = [0, 256], sizes = [32, 128], strides = [1, 1]} : vector<32x384xf32> to vector<32x128xf32>
    %cst_12 = arith.constant dense<0.000000e+00> : vector<32x128xf32>
    %39 = tpu.matmul %12, %36, %cst_12 {dimension_numbers = #tpu.dot_dimension_numbers<[1], [0], [0], [1], [0, 0, 1, 1], [], []>} : vector<32x32xf32>, vector<32x128xf32>, vector<32x128xf32> -> vector<32x128xf32>
    %cst_13 = arith.constant dense<0.000000e+00> : vector<32x128xf32>
    %40 = tpu.matmul %17, %38, %cst_13 {dimension_numbers = #tpu.dot_dimension_numbers<[1], [0], [0], [1], [0, 0, 1, 1], [], []>} : vector<32x32xf32>, vector<32x128xf32>, vector<32x128xf32> -> vector<32x128xf32>
    %41 = arith.addf %37, %39 : vector<32x128xf32>
    %42 = arith.addf %41, %40 : vector<32x128xf32>
    %43 = vector.broadcast %4 : vector<1x128xf32> to vector<32x128xf32>
    %44 = arith.addf %42, %43 : vector<32x128xf32>
    %cst_14 = arith.constant 0.000000e+00 : f32
    %45 = vector.broadcast %cst_14 : f32 to vector<32x128xf32>
    %46 = arith.maximumf %44, %45 : vector<32x128xf32>
    %47 = arith.addf %46, %33 : vector<32x128xf32>
    %cst_15 = arith.constant 0.000000e+00 : f32
    %48 = vector.broadcast %cst_15 : f32 to vector<2x128xf32>
    %49 = vector.extract_strided_slice %47 {offsets = [0, 0], sizes = [2, 128], strides = [1, 1]} : vector<32x128xf32> to vector<2x128xf32>
    %c0_16 = arith.constant 0 : index
    %c0_17 = arith.constant 0 : index
    %c0_18 = arith.constant 0 : index
    %50 = vector.load %arg4[%c0_16, %c0_17, %c0_18] : memref<16x128x128xf32, #tpu.memory_space<vmem>>, vector<1x128x128xf32>
    %51 = vector.shape_cast %50 : vector<1x128x128xf32> to vector<128x128xf32>
    %cst_19 = arith.constant dense<0.000000e+00> : vector<2x128xf32>
    %52 = tpu.matmul %49, %51, %cst_19 {dimension_numbers = #tpu.dot_dimension_numbers<[1], [0], [0], [1], [0, 0, 1, 1], [], []>} : vector<2x128xf32>, vector<128x128xf32>, vector<2x128xf32> -> vector<2x128xf32>
    %53 = arith.addf %48, %52 : vector<2x128xf32>
    %54 = vector.extract_strided_slice %47 {offsets = [2, 0], sizes = [2, 128], strides = [1, 1]} : vector<32x128xf32> to vector<2x128xf32>
    %c1 = arith.constant 1 : index
    %c0_20 = arith.constant 0 : index
    %c0_21 = arith.constant 0 : index
    %55 = vector.load %arg4[%c1, %c0_20, %c0_21] : memref<16x128x128xf32, #tpu.memory_space<vmem>>, vector<1x128x128xf32>
    %56 = vector.shape_cast %55 : vector<1x128x128xf32> to vector<128x128xf32>
    %cst_22 = arith.constant dense<0.000000e+00> : vector<2x128xf32>
    %57 = tpu.matmul %54, %56, %cst_22 {dimension_numbers = #tpu.dot_dimension_numbers<[1], [0], [0], [1], [0, 0, 1, 1], [], []>} : vector<2x128xf32>, vector<128x128xf32>, vector<2x128xf32> -> vector<2x128xf32>
    %58 = arith.addf %53, %57 : vector<2x128xf32>
    %59 = vector.extract_strided_slice %47 {offsets = [4, 0], sizes = [2, 128], strides = [1, 1]} : vector<32x128xf32> to vector<2x128xf32>
    %c2 = arith.constant 2 : index
    %c0_23 = arith.constant 0 : index
    %c0_24 = arith.constant 0 : index
    %60 = vector.load %arg4[%c2, %c0_23, %c0_24] : memref<16x128x128xf32, #tpu.memory_space<vmem>>, vector<1x128x128xf32>
    %61 = vector.shape_cast %60 : vector<1x128x128xf32> to vector<128x128xf32>
    %cst_25 = arith.constant dense<0.000000e+00> : vector<2x128xf32>
    %62 = tpu.matmul %59, %61, %cst_25 {dimension_numbers = #tpu.dot_dimension_numbers<[1], [0], [0], [1], [0, 0, 1, 1], [], []>} : vector<2x128xf32>, vector<128x128xf32>, vector<2x128xf32> -> vector<2x128xf32>
    %63 = arith.addf %58, %62 : vector<2x128xf32>
    %64 = vector.extract_strided_slice %47 {offsets = [6, 0], sizes = [2, 128], strides = [1, 1]} : vector<32x128xf32> to vector<2x128xf32>
    %c3 = arith.constant 3 : index
    %c0_26 = arith.constant 0 : index
    %c0_27 = arith.constant 0 : index
    %65 = vector.load %arg4[%c3, %c0_26, %c0_27] : memref<16x128x128xf32, #tpu.memory_space<vmem>>, vector<1x128x128xf32>
    %66 = vector.shape_cast %65 : vector<1x128x128xf32> to vector<128x128xf32>
    %cst_28 = arith.constant dense<0.000000e+00> : vector<2x128xf32>
    %67 = tpu.matmul %64, %66, %cst_28 {dimension_numbers = #tpu.dot_dimension_numbers<[1], [0], [0], [1], [0, 0, 1, 1], [], []>} : vector<2x128xf32>, vector<128x128xf32>, vector<2x128xf32> -> vector<2x128xf32>
    %68 = arith.addf %63, %67 : vector<2x128xf32>
    %69 = vector.extract_strided_slice %47 {offsets = [8, 0], sizes = [2, 128], strides = [1, 1]} : vector<32x128xf32> to vector<2x128xf32>
    %c4 = arith.constant 4 : index
    %c0_29 = arith.constant 0 : index
    %c0_30 = arith.constant 0 : index
    %70 = vector.load %arg4[%c4, %c0_29, %c0_30] : memref<16x128x128xf32, #tpu.memory_space<vmem>>, vector<1x128x128xf32>
    %71 = vector.shape_cast %70 : vector<1x128x128xf32> to vector<128x128xf32>
    %cst_31 = arith.constant dense<0.000000e+00> : vector<2x128xf32>
    %72 = tpu.matmul %69, %71, %cst_31 {dimension_numbers = #tpu.dot_dimension_numbers<[1], [0], [0], [1], [0, 0, 1, 1], [], []>} : vector<2x128xf32>, vector<128x128xf32>, vector<2x128xf32> -> vector<2x128xf32>
    %73 = arith.addf %68, %72 : vector<2x128xf32>
    %74 = vector.extract_strided_slice %47 {offsets = [10, 0], sizes = [2, 128], strides = [1, 1]} : vector<32x128xf32> to vector<2x128xf32>
    %c5 = arith.constant 5 : index
    %c0_32 = arith.constant 0 : index
    %c0_33 = arith.constant 0 : index
    %75 = vector.load %arg4[%c5, %c0_32, %c0_33] : memref<16x128x128xf32, #tpu.memory_space<vmem>>, vector<1x128x128xf32>
    %76 = vector.shape_cast %75 : vector<1x128x128xf32> to vector<128x128xf32>
    %cst_34 = arith.constant dense<0.000000e+00> : vector<2x128xf32>
    %77 = tpu.matmul %74, %76, %cst_34 {dimension_numbers = #tpu.dot_dimension_numbers<[1], [0], [0], [1], [0, 0, 1, 1], [], []>} : vector<2x128xf32>, vector<128x128xf32>, vector<2x128xf32> -> vector<2x128xf32>
    %78 = arith.addf %73, %77 : vector<2x128xf32>
    %79 = vector.extract_strided_slice %47 {offsets = [12, 0], sizes = [2, 128], strides = [1, 1]} : vector<32x128xf32> to vector<2x128xf32>
    %c6 = arith.constant 6 : index
    %c0_35 = arith.constant 0 : index
    %c0_36 = arith.constant 0 : index
    %80 = vector.load %arg4[%c6, %c0_35, %c0_36] : memref<16x128x128xf32, #tpu.memory_space<vmem>>, vector<1x128x128xf32>
    %81 = vector.shape_cast %80 : vector<1x128x128xf32> to vector<128x128xf32>
    %cst_37 = arith.constant dense<0.000000e+00> : vector<2x128xf32>
    %82 = tpu.matmul %79, %81, %cst_37 {dimension_numbers = #tpu.dot_dimension_numbers<[1], [0], [0], [1], [0, 0, 1, 1], [], []>} : vector<2x128xf32>, vector<128x128xf32>, vector<2x128xf32> -> vector<2x128xf32>
    %83 = arith.addf %78, %82 : vector<2x128xf32>
    %84 = vector.extract_strided_slice %47 {offsets = [14, 0], sizes = [2, 128], strides = [1, 1]} : vector<32x128xf32> to vector<2x128xf32>
    %c7 = arith.constant 7 : index
    %c0_38 = arith.constant 0 : index
    %c0_39 = arith.constant 0 : index
    %85 = vector.load %arg4[%c7, %c0_38, %c0_39] : memref<16x128x128xf32, #tpu.memory_space<vmem>>, vector<1x128x128xf32>
    %86 = vector.shape_cast %85 : vector<1x128x128xf32> to vector<128x128xf32>
    %cst_40 = arith.constant dense<0.000000e+00> : vector<2x128xf32>
    %87 = tpu.matmul %84, %86, %cst_40 {dimension_numbers = #tpu.dot_dimension_numbers<[1], [0], [0], [1], [0, 0, 1, 1], [], []>} : vector<2x128xf32>, vector<128x128xf32>, vector<2x128xf32> -> vector<2x128xf32>
    %88 = arith.addf %83, %87 : vector<2x128xf32>
    %89 = vector.extract_strided_slice %47 {offsets = [16, 0], sizes = [2, 128], strides = [1, 1]} : vector<32x128xf32> to vector<2x128xf32>
    %c8 = arith.constant 8 : index
    %c0_41 = arith.constant 0 : index
    %c0_42 = arith.constant 0 : index
    %90 = vector.load %arg4[%c8, %c0_41, %c0_42] : memref<16x128x128xf32, #tpu.memory_space<vmem>>, vector<1x128x128xf32>
    %91 = vector.shape_cast %90 : vector<1x128x128xf32> to vector<128x128xf32>
    %cst_43 = arith.constant dense<0.000000e+00> : vector<2x128xf32>
    %92 = tpu.matmul %89, %91, %cst_43 {dimension_numbers = #tpu.dot_dimension_numbers<[1], [0], [0], [1], [0, 0, 1, 1], [], []>} : vector<2x128xf32>, vector<128x128xf32>, vector<2x128xf32> -> vector<2x128xf32>
    %93 = arith.addf %88, %92 : vector<2x128xf32>
    %94 = vector.extract_strided_slice %47 {offsets = [18, 0], sizes = [2, 128], strides = [1, 1]} : vector<32x128xf32> to vector<2x128xf32>
    %c9 = arith.constant 9 : index
    %c0_44 = arith.constant 0 : index
    %c0_45 = arith.constant 0 : index
    %95 = vector.load %arg4[%c9, %c0_44, %c0_45] : memref<16x128x128xf32, #tpu.memory_space<vmem>>, vector<1x128x128xf32>
    %96 = vector.shape_cast %95 : vector<1x128x128xf32> to vector<128x128xf32>
    %cst_46 = arith.constant dense<0.000000e+00> : vector<2x128xf32>
    %97 = tpu.matmul %94, %96, %cst_46 {dimension_numbers = #tpu.dot_dimension_numbers<[1], [0], [0], [1], [0, 0, 1, 1], [], []>} : vector<2x128xf32>, vector<128x128xf32>, vector<2x128xf32> -> vector<2x128xf32>
    %98 = arith.addf %93, %97 : vector<2x128xf32>
    %99 = vector.extract_strided_slice %47 {offsets = [20, 0], sizes = [2, 128], strides = [1, 1]} : vector<32x128xf32> to vector<2x128xf32>
    %c10 = arith.constant 10 : index
    %c0_47 = arith.constant 0 : index
    %c0_48 = arith.constant 0 : index
    %100 = vector.load %arg4[%c10, %c0_47, %c0_48] : memref<16x128x128xf32, #tpu.memory_space<vmem>>, vector<1x128x128xf32>
    %101 = vector.shape_cast %100 : vector<1x128x128xf32> to vector<128x128xf32>
    %cst_49 = arith.constant dense<0.000000e+00> : vector<2x128xf32>
    %102 = tpu.matmul %99, %101, %cst_49 {dimension_numbers = #tpu.dot_dimension_numbers<[1], [0], [0], [1], [0, 0, 1, 1], [], []>} : vector<2x128xf32>, vector<128x128xf32>, vector<2x128xf32> -> vector<2x128xf32>
    %103 = arith.addf %98, %102 : vector<2x128xf32>
    %104 = vector.extract_strided_slice %47 {offsets = [22, 0], sizes = [2, 128], strides = [1, 1]} : vector<32x128xf32> to vector<2x128xf32>
    %c11 = arith.constant 11 : index
    %c0_50 = arith.constant 0 : index
    %c0_51 = arith.constant 0 : index
    %105 = vector.load %arg4[%c11, %c0_50, %c0_51] : memref<16x128x128xf32, #tpu.memory_space<vmem>>, vector<1x128x128xf32>
    %106 = vector.shape_cast %105 : vector<1x128x128xf32> to vector<128x128xf32>
    %cst_52 = arith.constant dense<0.000000e+00> : vector<2x128xf32>
    %107 = tpu.matmul %104, %106, %cst_52 {dimension_numbers = #tpu.dot_dimension_numbers<[1], [0], [0], [1], [0, 0, 1, 1], [], []>} : vector<2x128xf32>, vector<128x128xf32>, vector<2x128xf32> -> vector<2x128xf32>
    %108 = arith.addf %103, %107 : vector<2x128xf32>
    %109 = vector.extract_strided_slice %47 {offsets = [24, 0], sizes = [2, 128], strides = [1, 1]} : vector<32x128xf32> to vector<2x128xf32>
    %c12 = arith.constant 12 : index
    %c0_53 = arith.constant 0 : index
    %c0_54 = arith.constant 0 : index
    %110 = vector.load %arg4[%c12, %c0_53, %c0_54] : memref<16x128x128xf32, #tpu.memory_space<vmem>>, vector<1x128x128xf32>
    %111 = vector.shape_cast %110 : vector<1x128x128xf32> to vector<128x128xf32>
    %cst_55 = arith.constant dense<0.000000e+00> : vector<2x128xf32>
    %112 = tpu.matmul %109, %111, %cst_55 {dimension_numbers = #tpu.dot_dimension_numbers<[1], [0], [0], [1], [0, 0, 1, 1], [], []>} : vector<2x128xf32>, vector<128x128xf32>, vector<2x128xf32> -> vector<2x128xf32>
    %113 = arith.addf %108, %112 : vector<2x128xf32>
    %114 = vector.extract_strided_slice %47 {offsets = [26, 0], sizes = [2, 128], strides = [1, 1]} : vector<32x128xf32> to vector<2x128xf32>
    %c13 = arith.constant 13 : index
    %c0_56 = arith.constant 0 : index
    %c0_57 = arith.constant 0 : index
    %115 = vector.load %arg4[%c13, %c0_56, %c0_57] : memref<16x128x128xf32, #tpu.memory_space<vmem>>, vector<1x128x128xf32>
    %116 = vector.shape_cast %115 : vector<1x128x128xf32> to vector<128x128xf32>
    %cst_58 = arith.constant dense<0.000000e+00> : vector<2x128xf32>
    %117 = tpu.matmul %114, %116, %cst_58 {dimension_numbers = #tpu.dot_dimension_numbers<[1], [0], [0], [1], [0, 0, 1, 1], [], []>} : vector<2x128xf32>, vector<128x128xf32>, vector<2x128xf32> -> vector<2x128xf32>
    %118 = arith.addf %113, %117 : vector<2x128xf32>
    %119 = vector.extract_strided_slice %47 {offsets = [28, 0], sizes = [2, 128], strides = [1, 1]} : vector<32x128xf32> to vector<2x128xf32>
    %c14 = arith.constant 14 : index
    %c0_59 = arith.constant 0 : index
    %c0_60 = arith.constant 0 : index
    %120 = vector.load %arg4[%c14, %c0_59, %c0_60] : memref<16x128x128xf32, #tpu.memory_space<vmem>>, vector<1x128x128xf32>
    %121 = vector.shape_cast %120 : vector<1x128x128xf32> to vector<128x128xf32>
    %cst_61 = arith.constant dense<0.000000e+00> : vector<2x128xf32>
    %122 = tpu.matmul %119, %121, %cst_61 {dimension_numbers = #tpu.dot_dimension_numbers<[1], [0], [0], [1], [0, 0, 1, 1], [], []>} : vector<2x128xf32>, vector<128x128xf32>, vector<2x128xf32> -> vector<2x128xf32>
    %123 = arith.addf %118, %122 : vector<2x128xf32>
    %124 = vector.extract_strided_slice %47 {offsets = [30, 0], sizes = [2, 128], strides = [1, 1]} : vector<32x128xf32> to vector<2x128xf32>
    %c15 = arith.constant 15 : index
    %c0_62 = arith.constant 0 : index
    %c0_63 = arith.constant 0 : index
    %125 = vector.load %arg4[%c15, %c0_62, %c0_63] : memref<16x128x128xf32, #tpu.memory_space<vmem>>, vector<1x128x128xf32>
    %126 = vector.shape_cast %125 : vector<1x128x128xf32> to vector<128x128xf32>
    %cst_64 = arith.constant dense<0.000000e+00> : vector<2x128xf32>
    %127 = tpu.matmul %124, %126, %cst_64 {dimension_numbers = #tpu.dot_dimension_numbers<[1], [0], [0], [1], [0, 0, 1, 1], [], []>} : vector<2x128xf32>, vector<128x128xf32>, vector<2x128xf32> -> vector<2x128xf32>
    %128 = arith.addf %123, %127 : vector<2x128xf32>
    %129 = vector.broadcast %5 : vector<1x128xf32> to vector<2x128xf32>
    %130 = arith.addf %128, %129 : vector<2x128xf32>
    %c0_65 = arith.constant 0 : index
    %c0_66 = arith.constant 0 : index
    %131 = vector.load %arg6[%c0_65, %c0_66] : memref<2x128xf32, #tpu.memory_space<vmem>>, vector<2x128xf32>
    tpu.vector_store %arg6[%c0_65, %c0_66], %130 {strides = array<i32>} : memref<2x128xf32, #tpu.memory_space<vmem>>, vector<2x128xf32>,
    return
  }
  func.func @transform_0(%arg0: i32) -> (i32, i32) {
    %c0_i32 = arith.constant 0 : i32
    %c0_i32_0 = arith.constant 0 : i32
    %c0_i32_1 = arith.constant 0 : i32
    return %c0_i32, %c0_i32_0 : i32, i32
  }
  func.func @transform_1(%arg0: i32) -> (i32, i32) {
    %c0_i32 = arith.constant 0 : i32
    %c0_i32_0 = arith.constant 0 : i32
    %c0_i32_1 = arith.constant 0 : i32
    return %c0_i32, %c0_i32_0 : i32, i32
  }
  func.func @transform_2(%arg0: i32) -> (i32, i32) {
    %c0_i32 = arith.constant 0 : i32
    %c0_i32_0 = arith.constant 0 : i32
    %c0_i32_1 = arith.constant 0 : i32
    return %c0_i32, %c0_i32_0 : i32, i32
  }
  func.func @transform_3(%arg0: i32) -> (i32, i32, i32) {
    %c0_i32 = arith.constant 0 : i32
    %c0_i32_0 = arith.constant 0 : i32
    %c0_i32_1 = arith.constant 0 : i32
    %c0_i32_2 = arith.constant 0 : i32
    return %c0_i32, %c0_i32_0, %c0_i32_1 : i32, i32, i32
  }
  func.func @transform_4(%arg0: i32) -> (i32, i32) {
    %c0_i32 = arith.constant 0 : i32
    %c0_i32_0 = arith.constant 0 : i32
    %c0_i32_1 = arith.constant 0 : i32
    return %c0_i32, %c0_i32_0 : i32, i32
  }
  func.func @transform_5(%arg0: i32) -> (i32, i32) {
    %c0_i32 = arith.constant 0 : i32
    %c0_i32_0 = arith.constant 0 : i32
    %c0_i32_1 = arith.constant 0 : i32
    return %c0_i32, %c0_i32_0 : i32, i32
  }
}

</mosaic_0001>

<bundles_post_ra>
// kernel: forward.1
= control target key start
LH: loop header
LB: loop body
LE: loop exit
PB: predicated region body
PF: predicated region fallthrough
CT: control target
= control target key end

     0   :  { %10 = vsyncpa [#allocation3], 0  ;;  %s4626_s0 = inlined_call_operand.vmem [shape: f32[32,64], index: 0, kind: input, shape index: {}]   ;;  %s4627_s1 = inlined_call_operand.vmem [shape: f32[64,512], index: 1, kind: input, shape index: {}]   ;;  %s4628_s2 = inlined_call_operand.vmem [shape: f32[128,384], index: 2, kind: input, shape index: {}]   ;;  %s4629_s3 = inlined_call_operand.hbm [shape: f32[16,128,128], index: 3, kind: input, shape index: {}]   ;;  %s4630_s4 = inlined_call_operand.vmem [shape: f32[4,128], index: 4, kind: input, shape index: {}]   ;;  %s4631_s5 = inlined_call_operand.hbm [shape: f32[2,128], index: 5, kind: output, shape index: {}]  }
   0x1   :  { %11 = vsyncpa [#allocation4], 0  ;;  %s3970_s18 = smov [#allocation2]   ;;  %s3922_s22 = scalar_lea.hbm %s4629_s3, 32768 }
   0x2   :  { %s23_s19 = sshll.u32 %s3970_s18, 4  ;;  %p3923_p0 = scmp.ne.s32.totalorder %s4629_s3, %s3922_s22  ;;  %s24_s19 = int_to_ptr.vmem [resolvable:$true] %s23_s19 }
   0x3   :  { %p3926_p1 = scmp.lt.u32.totalorder %s3922_s22, %s4629_s3 }
   0x5   :  { %p3928_p2 = pnand %p3926_p1, %p3923_p0 }
   0x7   :  { %3931 = shalt.err (!%p3928_p2)
}
   0x8   :  { %s3932_s27 = scalar_lea.vmem %s24_s19, 32768  ;;  %p3937_p4 = scmp.lt.s32.totalorder %s24_s19, %s24_s19 }
   0x9   :  { %p3933_p3 = scmp.ne.s32.totalorder %s24_s19, %s3932_s27  ;;  %p3938_p5 = scmp.lt.s32.totalorder %s3932_s27, %s3932_s27 }
   0xb   :  { %p3939_p6 = por %p3938_p5, %p3937_p4 }
   0xd   :  { %p3940_p7 = pnand %p3939_p6, %p3933_p3 }
   0xf   :  { %3943 = shalt.err (!%p3940_p7)
}
  0x10   :  { %s3971_s28 = smov 128   ;;  %s3972_s29 = smov 8  }
  0x11   :  { %29 = dma.hbm_to_vmem [thread:$0]  %s4629_s3, 32768, %s24_s19, [#allocation3], %s3971_s28, %s3971_s28, %s3972_s29  }
  0x12   :  { %3966 = dma.done.wait [#allocation3], 32768  }
  0x13   :  { %3967 = vsyncadd [#allocation3], 4294934528  ;;  %v3973_v0 = vmov 0.0   ;;  %v77_v1 = vld [vmem:[%s4627_s1 + $0x8] sm:$0xff]  ;;  %v79_v3 = vld [vmem:[%s4627_s1 + $0x18] sm:$0xff]  ;;  %vm108_vm0 = vcmask 523264   ;;  %v40_v53 = vlaneseq }
  0x14   :  { %185 = vmatprep.mubr.f32.mxu0 %v3973_v0  ;;  %274 = vmatprep.mubr.f32.mxu1 %v3973_v0  ;;  %v81_v2 = vld [vmem:[%s4627_s1 + $0x28] sm:$0xff]  ;;  %v83_v5 = vld [vmem:[%s4627_s1 + $0x38] sm:$0xff]  ;;  %v76_v6 = vld [vmem:[%s4627_s1] sm:$0xff]  ;;  %vm299_vm2 = vcmask 261120   ;;  %vm3975_vm10 = vmmov 0   ;;  %s3976_s13 = smov [#allocation5]  }
  0x15   :  { %v3402_v4 = vpack.c.bf16 %v81_v2, %v77_v1  ;;  %v80_v7 = vld [vmem:[%s4627_s1 + $0x20] sm:$0xff]  ;;  %v3418_v8 = vpack.c.bf16 %v83_v5, %v79_v3  ;;  %v78_v10 = vld [vmem:[%s4627_s1 + $0x10] sm:$0xff]  ;;  %v85_v12 = vld [vmem:[%s4627_s1 + $0x48] sm:$0xff]  ;;  %v4143_v54 = vand.u32 127, %v40_v53  ;;  %v4145_v55 = vshrl.u32 %v40_v53, 7  ;;  %s2383_s14 = sshll.u32 %s3976_s13, 4  ;;  %s2384_s14 = int_to_ptr.vmem [resolvable:$true] %s2383_s14 }
  0x16   :  { %v3404_v9 = vpack.c.bf16 %v80_v7, %v76_v6  ;;  %v82_v11 = vld [vmem:[%s4627_s1 + $0x30] sm:$0xff]  ;;  %v89_v14 = vld [vmem:[%s4627_s1 + $0x68] sm:$0xff]  ;;  %v87_v15 = vld [vmem:[%s4627_s1 + $0x58] sm:$0xff]  ;;  %s3944_s15 = scalar_lea.vmem %s2384_s14, 32  ;;  %p3949_p9 = scmp.lt.s32.totalorder %s2384_s14, %s2384_s14 }
  0x17   :  { %3403 = vmatprep.subr.bf16.mxu0 %v3402_v4  ;;  %v3420_v13 = vpack.c.bf16 %v82_v11, %v78_v10  ;;  %v91_v16 = vld [vmem:[%s4627_s1 + $0x78] sm:$0xff]  ;;  %3419 = vmatprep.subr.bf16.mxu1 %v3418_v8  ;;  %v3406_v17 = vpack.c.bf16 %v89_v14, %v85_v12  ;;  %v84_v19 = vld [vmem:[%s4627_s1 + $0x40] sm:$0xff]  ;;  %v86_v21 = vld [vmem:[%s4627_s1 + $0x50] sm:$0xff]  ;;  %v4148_v56 = vadd.s32 2, %v4143_v54  ;;  %v60_v57 = vadd.s32 2, %v4145_v55  ;;  %p3945_p8 = scmp.ne.s32.totalorder %s2384_s14, %s3944_s15  ;;  %p3950_p10 = scmp.lt.s32.totalorder %s3944_s15, %s3944_s15 }
  0x18   :  { %3405 = vmatpush1.bf16.msra.mxu0 %v3404_v9  ;;  %v3422_v18 = vpack.c.bf16 %v91_v16, %v87_v15  ;;  %v88_v20 = vld [vmem:[%s4627_s1 + $0x60] sm:$0xff]  ;;  %v90_v23 = vld [vmem:[%s4627_s1 + $0x70] sm:$0xff]  ;;  %v93_v24 = vld [vmem:[%s4627_s1 + $0x88] sm:$0xff]  ;;  %v516_v2 = vsub.s32 1, %v4145_v55  ;;  %v42_v6 = vadd.s32 8, %v4145_v55  ;;  %v43_v10 = vadd.s32 16, %v4145_v55 }
  0x19   :  { %3421 = vmatpush1.bf16.msra.mxu1 %v3420_v13  ;;  %v3408_v22 = vpack.c.bf16 %v88_v20, %v84_v19  ;;  %v97_v25 = vld [vmem:[%s4627_s1 + $0xa8] sm:$0xff]  ;;  %3407 = vmatprep.subr.bf16.mxu0 %v3406_v17  ;;  %v3424_v26 = vpack.c.bf16 %v90_v23, %v86_v21  ;;  %v95_v28 = vld [vmem:[%s4627_s1 + $0x98] sm:$0xff]  ;;  %v92_v30 = vld [vmem:[%s4627_s1 + $0x80] sm:$0xff]  ;;  %vm48_vm1 = vcmp.eq.s32.totalorder %v4145_v55, %v4148_v56  ;;  %v44_v17 = vadd.s32 24, %v4145_v55  ;;  %p3951_p11 = por %p3950_p10, %p3949_p9 }
  0x1a   :  { %3423 = vmatprep.subr.bf16.mxu1 %v3422_v18  ;;  %v3410_v27 = vpack.c.bf16 %v97_v25, %v93_v24  ;;  %v99_v29 = vld [vmem:[%s4627_s1 + $0xb8] sm:$0xff]  ;;  %v96_v32 = vld [vmem:[%s4627_s1 + $0xa0] sm:$0xff]  ;;  %v94_v33 = vld [vmem:[%s4627_s1 + $0x90] sm:$0xff]  ;;  %v4154_v58 = vsel %vm48_vm1, 1.0, %v3973_v0  ;;  %vm64_vm3 = vcmp.eq.s32.totalorder %v4143_v54, %v60_v57  ;;  %v61_v15 = vadd.s32 2, %v42_v6 }
  0x1b   :  { %v3426_v31 = vpack.c.bf16 %v99_v29, %v95_v28  ;;  %v98_v34 = vld [vmem:[%s4627_s1 + $0xb0] sm:$0xff]  ;;  %v3412_v35 = vpack.c.bf16 %v96_v32, %v92_v30  ;;  %v101_v36 = vld [vmem:[%s4627_s1 + $0xc8] sm:$0xff]  ;;  %v103_v38 = vld [vmem:[%s4627_s1 + $0xd8] sm:$0xff]  ;;  %v4160_v59 = vsel %vm64_vm3, 1.0, %v3973_v0  ;;  %v62_v21 = vadd.s32 2, %v43_v10  ;;  %p3952_p12 = pnand %p3951_p11, %p3945_p8 }
  0x1c   :  { %3409 = vmatpush1.bf16.msra.mxu0 %v3408_v22  ;;  %v105_v37 = vld [vmem:[%s4627_s1 + $0xe8] sm:$0xff]  ;;  %v3428_v39 = vpack.c.bf16 %v98_v34, %v94_v33  ;;  %v107_v41 = vld [vmem:[%s4627_s1 + $0xf8] sm:$0xff]  ;;  %v100_v42 = vld [vmem:[%s4627_s1 + $0xc0] sm:$0xff]  ;;  %vm49_vm4 = vcmp.eq.s32.totalorder %v42_v6, %v4148_v56  ;;  %vm65_vm5 = vcmp.eq.s32.totalorder %v4143_v54, %v61_v15  ;;  %vm50_vm6 = vcmp.eq.s32.totalorder %v43_v10, %v4148_v56 }
  0x1d   :  { %3425 = vmatpush1.bf16.msra.mxu1 %v3424_v26  ;;  %3411 = vmatprep.subr.bf16.mxu0 %v3410_v27  ;;  %v3414_v40 = vpack.c.bf16 %v105_v37, %v101_v36  ;;  %v104_v43 = vld [vmem:[%s4627_s1 + $0xe0] sm:$0xff]  ;;  %v3430_v44 = vpack.c.bf16 %v107_v41, %v103_v38  ;;  %v102_v45 = vld [vmem:[%s4627_s1 + $0xd0] sm:$0xff]  ;;  %v36_v50 = vld [vmem:[%s4626_s0 + $0x8] sm:$0xff]  ;;  %vm66_vm7 = vcmp.eq.s32.totalorder %v4143_v54, %v62_v21  ;;  %v4225_v38 = vsel %vm49_vm4, 1.0, %v3973_v0 }
  0x1e   :  { %3427 = vmatprep.subr.bf16.mxu1 %v3426_v31  ;;  %v106_v46 = vld [vmem:[%s4627_s1 + $0xf0] sm:$0xff]  ;;  %v3416_v47 = vpack.c.bf16 %v104_v43, %v100_v42  ;;  %v35_v49 = vld [vmem:[%s4626_s0] sm:$0xff]  ;;  %v38_v52 = vld [vmem:[%s4626_s0 + $0x18] sm:$0xff]  ;;  %v63_v31 = vadd.s32 2, %v44_v17  ;;  %v4236_v41 = vsel %vm65_vm5, 1.0, %v3973_v0  ;;  %v4241_v42 = vsel %vm50_vm6, 1.0, %v3973_v0 }
  0x1f   :  { %v3432_v48 = vpack.c.bf16 %v106_v46, %v102_v45  ;;  %v37_v51 = vld [vmem:[%s4626_s0 + $0x10] sm:$0xff]  ;;  %v4175_v7 = vld [vmem:[%s4630_s4] sm:$0xf]  ;;  %v523_v18 = vld [vmem:[%s4628_s2 + $0x8] sm:$0xff]  ;;  %vm51_vm8 = vcmp.eq.s32.totalorder %v44_v17, %v4148_v56 }
  0x20   :  { %3413 = vmatpush1.bf16.msra.mxu0 %v3412_v35  ;;  %v4181_v12 = vrot.slane %v4175_v7, %v516_v2  ;;  %v526_v19 = vld [vmem:[%s4628_s2 + $0x20] sm:$0xff]  ;;  %v524_v22 = vld [vmem:[%s4628_s2 + $0x10] sm:$0xff]  ;;  %v527_v23 = vld [vmem:[%s4628_s2 + $0x28] sm:$0xff]  ;;  %vm67_vm9 = vcmp.eq.s32.totalorder %v4143_v54, %v63_v31 }
  0x21   :  { %3429 = vmatpush1.bf16.msra.mxu1 %v3428_v39  ;;  %3415 = vmatprep.subr.bf16.mxu0 %v3414_v40  ;;  %v3450_v28 = vpack.c.bf16 %v526_v19, %v523_v18  ;;  %v522_v32 = vld [vmem:[%s4628_s2] sm:$0xff]  ;;  %v525_v33 = vld [vmem:[%s4628_s2 + $0x18] sm:$0xff]  ;;  %v3482_v34 = vpack.c.bf16 %v527_v23, %v524_v22  ;;  %v532_v37 = vld [vmem:[%s4628_s2 + $0x50] sm:$0xff]  ;;  %v4278_v54 = vsel %vm67_vm9, 1.0, %v3973_v0 }
  0x22   :  { %3431 = vmatprep.subr.bf16.mxu1 %v3430_v44  ;;  %v529_v36 = vld [vmem:[%s4628_s2 + $0x38] sm:$0xff]  ;;  %v530_v39 = vld [vmem:[%s4628_s2 + $0x40] sm:$0xff]  ;;  %v3452_v43 = vpack.c.bf16 %v525_v33, %v522_v32  ;;  %v4245_v44 = vsel %vm66_vm7, 1.0, %v3973_v0  ;;  %v528_v46 = vld [vmem:[%s4628_s2 + $0x30] sm:$0xff] }
  0x23   :  { %v533_v40 = vld [vmem:[%s4628_s2 + $0x58] sm:$0xff]  ;;  %v3454_v45 = vpack.c.bf16 %v532_v37, %v529_v36  ;;  %v539_v53 = vld [vmem:[%s4628_s2 + $0x88] sm:$0xff]  ;;  %v550_v17 = vld [vmem:[%s4628_s2 + $0xe0] sm:$0xff] }
  0x24   :  { %3417 = vmatpush1.bf16.msra.mxu0 %v3416_v47  ;;  %v531_v47 = vld [vmem:[%s4628_s2 + $0x48] sm:$0xff]  ;;  %v541_v2 = vld [vmem:[%s4628_s2 + $0x98] sm:$0xff]  ;;  %v548_v18 = vld [vmem:[%s4628_s2 + $0xd0] sm:$0xff] }
  0x25   :  { %3433 = vmatpush1.bf16.msra.mxu1 %v3432_v48  ;;  %v3486_v48 = vpack.c.bf16 %v533_v40, %v530_v39  ;;  %v3456_v56 = vpack.c.bf16 %v531_v47, %v528_v46  ;;  %v545_v6 = vld [vmem:[%s4628_s2 + $0xb8] sm:$0xff]  ;;  %v551_v19 = vld [vmem:[%s4628_s2 + $0xe8] sm:$0xff]  ;;  %v546_v23 = vld [vmem:[%s4628_s2 + $0xc0] sm:$0xff] }
  0x26   :  { %v552_v33 = vld [vmem:[%s4628_s2 + $0xf0] sm:$0xff]  ;;  %v559_v39 = vld [vmem:[%s4628_s2 + $0x128] sm:$0xff]  ;;  %v562_v40 = vld [vmem:[%s4628_s2 + $0x140] sm:$0xff] }
  0x27   :  { %2400 = vmatmul.mubr.msk.f32.vlgmr.msra.gmra.mrb[0].mxu0 %vm108_vm0, %v35_v49  ;;  %v561_v46 = vld [vmem:[%s4628_s2 + $0x138] sm:$0xff]  ;;  %v560_v47 = vld [vmem:[%s4628_s2 + $0x130] sm:$0xff] }
  0x28   :  { %2404 = vmatmul.mubr.msk.f32.vlgmr.msra.gmra.mrb[0].mxu1 %vm108_vm0, %v35_v49  ;;  %191 = vmatprep.mubr.f32.mxu0 %v3973_v0  ;;  %v535_v49 = vld [vmem:[%s4628_s2 + $0x68] sm:$0xff] }
  0x29   :  { %280 = vmatprep.mubr.f32.mxu1 %v3973_v0 }
  0x2b   :  { %2401 = vmatmul.mubr.msk.f32.gmra.mrb[2].mxu0 %vm108_vm0, %v36_v50 }
  0x2c   :  { %2405 = vmatmul.mubr.msk.f32.gmra.mrb[2].mxu1 %vm108_vm0, %v36_v50  ;;  %197 = vmatprep.mubr.f32.mxu0 %v3973_v0  ;;  %v538_v50 = vld [vmem:[%s4628_s2 + $0x80] sm:$0xff] }
  0x2d   :  { %286 = vmatprep.mubr.f32.mxu1 %v3973_v0  ;;  %v3458_v57 = vpack.c.bf16 %v538_v50, %v535_v49  ;;  %v563_v49 = vld [vmem:[%s4628_s2 + $0x148] sm:$0xff] }
  0x2e   :  { %v3506_v50 = vpack.c.bf16 %v563_v49, %v560_v47  ;;  %v939_v49 = vld [vmem:[#allocation2 + $0x8] sm:$0xff] }
  0x2f   :  { %2402 = vmatmul.mubr.msk.f32.gmra.mrb[4].mxu0 %vm108_vm0, %v37_v51 }
  0x30   :  { %2406 = vmatmul.mubr.msk.f32.gmra.mrb[4].mxu1 %vm108_vm0, %v37_v51  ;;  %203 = vmatprep.mubr.f32.mxu0 %v3973_v0  ;;  %v4267_v51 = vsel %vm51_vm8, 1.0, %v3973_v0 }
  0x31   :  { %292 = vmatprep.mubr.f32.mxu1 %v3973_v0 }
  0x33   :  { %2403 = vmatmul.mubr.msk.f32.gmra.mrb[6].mxu0 %vm108_vm0, %v38_v52 }
  0x34   :  { %2407 = vmatmul.mubr.msk.f32.gmra.mrb[6].mxu1 %vm108_vm0, %v38_v52  ;;  %2756 = vmatprep.mubr.msk.f32.mxu0 %vm299_vm2, %v4154_v58  ;;  %v536_v52 = vld [vmem:[%s4628_s2 + $0x70] sm:$0xff] }
  0x35   :  { %2770 = vmatprep.mubr.msk.f32.mxu1 %vm299_vm2, %v4160_v59 }
  0xfa   :  { %v187_v60 = vpop.f32.mrb[0].mxu0 }
  0xfb   :  { %v4164_v61 = vpop.f32.mrb[1].mxu0  ;;  %v276_v62 = vpop.f32.mrb[0].mxu1 }
  0xfc   :  { %v4166_v63 = vpop.f32.mrb[1].mxu1 }
  0xfe   :  { %v193_v1 = vpop.f32.mrb[2].mxu0 }
  0xff   :  { %v3434_v3 = vpack.c.bf16 %v193_v1, %v187_v60  ;;  %v282_v4 = vpop.f32.mrb[2].mxu1  ;;  %v4169_v5 = vpop.f32.mrb[3].mxu0  ;;  %v534_v60 = vld [vmem:[%s4628_s2 + $0x60] sm:$0xff]  ;;  %v3490_v1 = vpack.c.bf16 %v539_v53, %v536_v52  ;;  %v565_v52 = vld [vmem:[%s4628_s2 + $0x158] sm:$0xff]  ;;  %v568_v53 = vld [vmem:[%s4628_s2 + $0x170] sm:$0xff] }
 0x100   :  { %v3442_v8 = vpack.c.bf16 %v282_v4, %v276_v62  ;;  %v4177_v9 = vpop.f32.mrb[3].mxu1  ;;  %v537_v62 = vld [vmem:[%s4628_s2 + $0x78] sm:$0xff]  ;;  %v542_v4 = vld [vmem:[%s4628_s2 + $0xa0] sm:$0xff] }
 0x101   :  { %3435 = vmatprep.subr.bf16.mxu0 %v3434_v3  ;;  %v3494_v15 = vpack.c.bf16 %v545_v6, %v542_v4  ;;  %v504_v4 = vsub.s32 0, %v4145_v55 }
 0x102   :  { %3443 = vmatprep.subr.bf16.mxu1 %v3442_v8  ;;  %v199_v11 = vpop.f32.mrb[4].mxu0  ;;  %3437 = vmatpush3.bf16.msra.mxu0 %v3434_v3  ;;  %v544_v3 = vld [vmem:[%s4628_s2 + $0xb0] sm:$0xff] }
 0x103   :  { %3445 = vmatpush3.bf16.msra.mxu1 %v3442_v8  ;;  %v4183_v13 = vpop.f32.mrb[5].mxu0  ;;  %v288_v14 = vpop.f32.mrb[4].mxu1  ;;  %v3460_v8 = vpack.c.bf16 %v537_v62, %v534_v60  ;;  %v3462_v10 = vpack.c.bf16 %v544_v3, %v541_v2  ;;  %v567_v60 = vld [vmem:[%s4628_s2 + $0x168] sm:$0xff]  ;;  %v566_v62 = vld [vmem:[%s4628_s2 + $0x160] sm:$0xff]  ;;  %v569_v2 = vld [vmem:[%s4628_s2 + $0x178] sm:$0xff] }
 0x104   :  { %v290_v16 = vpop.f32.mrb[5].mxu1  ;;  %v3510_v3 = vpack.c.bf16 %v569_v2, %v566_v62  ;;  %v955_v2 = vld [vmem:[#allocation2 + $0x80] sm:$0xff] }
 0x105   :  { %v4193_v20 = vadd.f32 %v4181_v12, %v290_v16  ;;  %v547_v16 = vld [vmem:[%s4628_s2 + $0xc8] sm:$0xff] }
 0x106   :  { %v205_v24 = vpop.f32.mrb[6].mxu0  ;;  %v3466_v22 = vpack.c.bf16 %v550_v17, %v547_v16 }
 0x107   :  { %v3438_v25 = vpack.c.bf16 %v205_v24, %v199_v11  ;;  %v294_v26 = vpop.f32.mrb[6].mxu1  ;;  %v4201_v27 = vpop.f32.mrb[7].mxu0  ;;  %v540_v11 = vld [vmem:[%s4628_s2 + $0x90] sm:$0xff]  ;;  %v549_v24 = vld [vmem:[%s4628_s2 + $0xd8] sm:$0xff] }
 0x108   :  { %v3446_v29 = vpack.c.bf16 %v294_v26, %v288_v14  ;;  %v296_v30 = vpop.f32.mrb[7].mxu1  ;;  %v543_v14 = vld [vmem:[%s4628_s2 + $0xa8] sm:$0xff]  ;;  %v553_v26 = vld [vmem:[%s4628_s2 + $0xf8] sm:$0xff]  ;;  %v3468_v31 = vpack.c.bf16 %v549_v24, %v546_v23 }
 0x109   :  { %v4213_v35 = vadd.f32 %v4181_v12, %v296_v30  ;;  %3439 = vmatprep.subr.bf16.mxu0 %v3438_v25  ;;  %v3464_v21 = vpack.c.bf16 %v543_v14, %v540_v11  ;;  %v557_v30 = vld [vmem:[%s4628_s2 + $0x118] sm:$0xff]  ;;  %v505_v14 = vrot.slane %v4175_v7, %v504_v4 }
 0x10a   :  { %3447 = vmatprep.subr.bf16.mxu1 %v3446_v29  ;;  %3441 = vmatpush3.bf16.msra.mxu0 %v3438_v25  ;;  %v3498_v25 = vpack.c.bf16 %v551_v19, %v548_v18 }
 0x10b   :  { %3449 = vmatpush3.bf16.msra.mxu1 %v3446_v29  ;;  %3451 = vmatprep.subr.bf16.mxu0 %v3450_v28  ;;  %v556_v28 = vld [vmem:[%s4628_s2 + $0x110] sm:$0xff]  ;;  %v554_v29 = vld [vmem:[%s4628_s2 + $0x100] sm:$0xff] }
 0x10c   :  { %3483 = vmatprep.subr.bf16.mxu1 %v3482_v34  ;;  %v3470_v32 = vpack.c.bf16 %v556_v28, %v553_v26  ;;  %v3502_v36 = vpack.c.bf16 %v557_v30, %v554_v29 }
 0x10d   :  { %2757 = vmatmul.mubr.msk.f32.vlgmr.msra.gmra.mrb[8].mxu0 %vm299_vm2, %v4225_v38 }
 0x10e   :  { %2771 = vmatmul.mubr.msk.f32.vlgmr.msra.gmra.mrb[8].mxu1 %vm299_vm2, %v4236_v41  ;;  %2759 = vmatprep.mubr.msk.f32.mxu0 %vm299_vm2, %v4241_v42 }
 0x10f   :  { %2773 = vmatprep.mubr.msk.f32.mxu1 %vm299_vm2, %v4245_v44  ;;  %3453 = vmatpush1.bf16.msra.mxu0 %v3452_v43  ;;  %v3474_v43 = vpack.c.bf16 %v562_v40, %v559_v39 }
 0x110   :  { %3485 = vmatpush3.bf16.msra.mxu1 %v3482_v34  ;;  %3455 = vmatprep.subr.bf16.mxu0 %v3454_v45  ;;  %v555_v34 = vld [vmem:[%s4628_s2 + $0x108] sm:$0xff]  ;;  %v558_v45 = vld [vmem:[%s4628_s2 + $0x120] sm:$0xff] }
 0x111   :  { %2760 = vmatmul.mubr.msk.f32.gmra.mrb[10].mxu0 %vm299_vm2, %v4267_v51  ;;  %3487 = vmatprep.subr.bf16.mxu1 %v3486_v48  ;;  %v3472_v37 = vpack.c.bf16 %v555_v34, %v552_v33 }
 0x112   :  { %2774 = vmatmul.mubr.msk.f32.gmra.mrb[10].mxu1 %vm299_vm2, %v4278_v54  ;;  %634 = vmatprep.mubr.f32.mxu0 %v3973_v0 }
 0x113   :  { %3457 = vmatpush1.bf16.msra.mxu0 %v3456_v56  ;;  %v3478_v56 = vpack.c.bf16 %v568_v53, %v565_v52  ;;  %v3974_v53 = vmov 0.0|0.0  }
 0x114   :  { %3489 = vmatpush3.bf16.msra.mxu1 %v3486_v48  ;;  %3459 = vmatprep.subr.bf16.mxu0 %v3458_v57  ;;  %v3476_v48 = vpack.c.bf16 %v561_v46, %v558_v45  ;;  %v564_v57 = vld [vmem:[%s4628_s2 + $0x150] sm:$0xff] }
 0x115   :  { %3491 = vmatprep.subr.bf16.mxu1 %v3490_v1 }
 0x117   :  { %3461 = vmatpush1.bf16.msra.mxu0 %v3460_v8 }
 0x118   :  { %3493 = vmatpush3.bf16.msra.mxu1 %v3490_v1  ;;  %3463 = vmatprep.subr.bf16.mxu0 %v3462_v10  ;;  %v3480_v1 = vpack.c.bf16 %v567_v60, %v564_v57  ;;  %v941_v57 = vld [vmem:[#allocation2 + $0x18] sm:$0xff] }
 0x119   :  { %3495 = vmatprep.subr.bf16.mxu1 %v3494_v15 }
 0x11b   :  { %3465 = vmatpush1.bf16.msra.mxu0 %v3464_v21 }
 0x11c   :  { %3497 = vmatpush3.bf16.msra.mxu1 %v3494_v15  ;;  %3467 = vmatprep.subr.bf16.mxu0 %v3466_v22 }
 0x11d   :  { %3499 = vmatprep.subr.bf16.mxu1 %v3498_v25 }
 0x11f   :  { %3469 = vmatpush1.bf16.msra.mxu0 %v3468_v31 }
 0x120   :  { %3501 = vmatpush3.bf16.msra.mxu1 %v3498_v25  ;;  %3471 = vmatprep.subr.bf16.mxu0 %v3470_v32 }
 0x121   :  { %3503 = vmatprep.subr.bf16.mxu1 %v3502_v36 }
 0x123   :  { %3473 = vmatpush1.bf16.msra.mxu0 %v3472_v37 }
 0x124   :  { %3505 = vmatpush3.bf16.msra.mxu1 %v3502_v36  ;;  %3475 = vmatprep.subr.bf16.mxu0 %v3474_v43 }
 0x125   :  { %3507 = vmatprep.subr.bf16.mxu1 %v3506_v50 }
 0x127   :  { %3477 = vmatpush1.bf16.msra.mxu0 %v3476_v48  ;;  %v938_v48 = vld [vmem:[#allocation2] sm:$0xff] }
 0x128   :  { %3509 = vmatpush3.bf16.msra.mxu1 %v3506_v50  ;;  %3479 = vmatprep.subr.bf16.mxu0 %v3478_v56  ;;  %v3555_v52 = vpack.c.bf16 %v939_v49, %v938_v48  ;;  %v940_v56 = vld [vmem:[#allocation2 + $0x10] sm:$0xff] }
 0x129   :  { %3511 = vmatprep.subr.bf16.mxu1 %v3510_v3  ;;  %v3558_v4 = vpack.c.bf16 %v941_v57, %v940_v56 }
 0x12b   :  { %3481 = vmatpush1.bf16.msra.mxu0 %v3480_v1 }
 0x12c   :  { %3513 = vmatpush3.bf16.msra.mxu1 %v3510_v3  ;;  %v956_v3 = vld [vmem:[#allocation2 + $0x88] sm:$0xff] }
 0x1e0   :  { %v2758_v6 = vpop.f32.mrb[8].mxu0 }
 0x1e1   :  { %v495_v8 = vadd.f32 %v2758_v6, %v4169_v5  ;;  %v378_v10 = vpop.f32.mrb[9].mxu0  ;;  %v2772_v11 = vpop.f32.mrb[8].mxu1  ;;  %v942_v6 = vld [vmem:[#allocation2 + $0x20] sm:$0xff] }
 0x1e2   :  { %v494_v15 = vadd.f32 %v378_v10, %v4164_v61  ;;  %v475_v16 = vpop.f32.mrb[9].mxu1  ;;  %v3531_v10 = vpack.c.bf16 %v956_v3, %v955_v2 }
 0x1e3   :  { %v499_v17 = vadd.f32 %v2772_v11, %v495_v8  ;;  %v943_v8 = vld [vmem:[#allocation2 + $0x28] sm:$0xff]  ;;  %v958_v11 = vld [vmem:[#allocation2 + $0x98] sm:$0xff] }
 0x1e4   :  { %v498_v18 = vadd.f32 %v494_v15, %v475_v16  ;;  %v2761_v19 = vpop.f32.mrb[10].mxu0  ;;  %v945_v15 = vld [vmem:[#allocation2 + $0x38] sm:$0xff] }
 0x1e5   :  { %v507_v21 = vadd.f32 %v505_v14, %v499_v17  ;;  %v497_v22 = vadd.f32 %v2761_v19, %v4201_v27  ;;  %v388_v23 = vpop.f32.mrb[11].mxu0  ;;  %v2775_v24 = vpop.f32.mrb[10].mxu1  ;;  %v960_v17 = vld [vmem:[#allocation2 + $0xa8] sm:$0xff] }
 0x1e6   :  { %v506_v25 = vadd.f32 %v505_v14, %v498_v18  ;;  %v496_v26 = vadd.f32 %v388_v23, %v4183_v13  ;;  %v485_v28 = vpop.f32.mrb[11].mxu1  ;;  %v947_v19 = vld [vmem:[#allocation2 + $0x48] sm:$0xff] }
 0x1e7   :  { %v501_v5 = vadd.f32 %v2775_v24, %v497_v22  ;;  %v511_v31 = vmax.f32 %v507_v21, 0.0  ;;  %v962_v22 = vld [vmem:[#allocation2 + $0xb8] sm:$0xff] }
 0x1e8   :  { %v510_v29 = vmax.f32 %v506_v25, 0.0  ;;  %v500_v30 = vadd.f32 %v496_v26, %v485_v28  ;;  %v963_v25 = vld [vmem:[#allocation2 + $0xc0] sm:$0xff]  ;;  %v948_v28 = vld [vmem:[#allocation2 + $0x50] sm:$0xff] }
 0x1e9   :  { %v509_v32 = vadd.f32 %v505_v14, %v501_v5  ;;  %v949_v5 = vld [vmem:[#allocation2 + $0x58] sm:$0xff] }
 0x1ea   :  { %v508_v33 = vadd.f32 %v505_v14, %v500_v30  ;;  %635 = vmatmul.mubr.f32.vlgmr.msra.gmra.mrb[12].mxu0 %v510_v29  ;;  %2808 = vmatprep.mubr.f32.mxu1 %v510_v29  ;;  %v3561_v14 = vpack.c.bf16 %v943_v8, %v942_v6  ;;  %v3570_v29 = vpack.c.bf16 %v949_v5, %v948_v28  ;;  %v965_v30 = vld [vmem:[#allocation2 + $0xd0] sm:$0xff] }
 0x1eb   :  { %2809 = vmatmul.mubr.f32.vlgmr.msra.gmra.mrb[12].mxu1 %v511_v31  ;;  %640 = vmatprep.mubr.f32.mxu0 %v3973_v0  ;;  %v513_v34 = vmax.f32 %v509_v32, 0.0 }
 0x1ec   :  { %v512_v61 = vmax.f32 %v508_v33, 0.0  ;;  %v950_v33 = vld [vmem:[#allocation2 + $0x60] sm:$0xff] }
 0x1ee   :  { %641 = vmatmul.mubr.f32.gmra.mrb[14].mxu0 %v511_v31  ;;  %2811 = vmatprep.mubr.f32.mxu1 %v512_v61  ;;  %v966_v31 = vld [vmem:[#allocation2 + $0xd8] sm:$0xff] }
 0x1ef   :  { %2812 = vmatmul.mubr.f32.gmra.mrb[14].mxu1 %v513_v34  ;;  %646 = vmatprep.mubr.f32.mxu0 %v3973_v0  ;;  %v3546_v32 = vpack.c.bf16 %v966_v31, %v965_v30  ;;  %v1209_v30 = vld [vmem:[#allocation2 + $0x1a0] sm:$0xff]  ;;  %v1210_v31 = vld [vmem:[#allocation2 + $0x1a8] sm:$0xff] }
 0x1f0   :  { %2822 = vmatprep.mubr.msk.f32.mxu1 %vm299_vm2, %v4154_v58 }
 0x1f2   :  { %647 = vmatmul.mubr.f32.gmra.mrb[16].mxu0 %v512_v61  ;;  %v951_v61 = vld [vmem:[#allocation2 + $0x68] sm:$0xff] }
 0x1f3   :  { %652 = vmatprep.mubr.f32.mxu0 %v3973_v0 }
 0x1f6   :  { %653 = vmatmul.mubr.f32.gmra.mrb[18].mxu0 %v513_v34  ;;  %v3573_v34 = vpack.c.bf16 %v951_v61, %v950_v33  ;;  %v1120_v33 = vld [vmem:[#allocation2 + $0x128] sm:$0xff]  ;;  %v3609_v61 = vpack.c.bf16 %v1210_v31, %v1209_v30  ;;  %v1301_v31 = vld [vmem:[#allocation2 + $0x230] sm:$0xff] }
 0x1f7   :  { %2836 = vmatprep.mubr.msk.f32.mxu0 %vm299_vm2, %v4160_v59 }
 0x2bd   :  { %v636_v13 = vpop.f32.mrb[12].mxu0 }
 0x2be   :  { %v4394_v27 = vpop.f32.mrb[13].mxu0  ;;  %v2810_v36 = vpop.f32.mrb[12].mxu1 }
 0x2bf   :  { %v725_v37 = vpop.f32.mrb[13].mxu1 }
 0x2c0   :  { %v3522_v39 = vpack.c.bf16 %v2810_v36, %v725_v37  ;;  %v968_v36 = vld [vmem:[#allocation2 + $0xe8] sm:$0xff] }
 0x2c1   :  { %v642_v40 = vpop.f32.mrb[14].mxu0 }
 0x2c2   :  { %v3514_v43 = vpack.c.bf16 %v642_v40, %v636_v13  ;;  %v4396_v45 = vpop.f32.mrb[15].mxu0  ;;  %v2813_v46 = vpop.f32.mrb[14].mxu1  ;;  %3523 = vmatprep.subr.bf16.mxu0 %v3522_v39  ;;  %v967_v13 = vld [vmem:[#allocation2 + $0xe0] sm:$0xff]  ;;  %v953_v40 = vld [vmem:[#allocation2 + $0x78] sm:$0xff] }
 0x2c3   :  { %v735_v58 = vpop.f32.mrb[15].mxu1  ;;  %3525 = vmatpush3.bf16.msra.mxu0 %v3522_v39  ;;  %v3549_v37 = vpack.c.bf16 %v968_v36, %v967_v13  ;;  %v952_v39 = vld [vmem:[#allocation2 + $0x70] sm:$0xff] }
 0x2c4   :  { %v3526_v47 = vpack.c.bf16 %v2813_v46, %v735_v58  ;;  %3515 = vmatprep.subr.bf16.mxu1 %v3514_v43  ;;  %v969_v46 = vld [vmem:[#allocation2 + $0xf0] sm:$0xff]  ;;  %v970_v58 = vld [vmem:[#allocation2 + $0xf8] sm:$0xff] }
 0x2c5   :  { %v648_v50 = vpop.f32.mrb[16].mxu0  ;;  %3517 = vmatpush3.bf16.msra.mxu1 %v3514_v43  ;;  %v3576_v43 = vpack.c.bf16 %v953_v40, %v952_v39  ;;  %v1121_v36 = vld [vmem:[#allocation2 + $0x130] sm:$0xff]  ;;  %v1213_v40 = vld [vmem:[#allocation2 + $0x1c0] sm:$0xff] }
 0x2c6   :  { %v4398_v59 = vpop.f32.mrb[17].mxu0  ;;  %3527 = vmatprep.subr.bf16.mxu0 %v3526_v47 }
 0x2c7   :  { %3529 = vmatpush3.bf16.msra.mxu0 %v3526_v47  ;;  %v3552_v47 = vpack.c.bf16 %v970_v58, %v969_v46  ;;  %v1123_v58 = vld [vmem:[#allocation2 + $0x140] sm:$0xff] }
 0x2c8   :  { %3554 = vmatprep.subr.bf16.mxu0 %v3974_v53 }
 0x2c9   :  { %v654_v60 = vpop.f32.mrb[18].mxu0 }
 0x2ca   :  { %v3518_v62 = vpack.c.bf16 %v654_v60, %v648_v50  ;;  %v4401_v1 = vpop.f32.mrb[19].mxu0  ;;  %2837 = vmatmul.mubr.msk.f32.vlgmr.msra.gmra.mrb[20].mxu0 %vm299_vm2, %v4236_v41  ;;  %v957_v41 = vld [vmem:[#allocation2 + $0x90] sm:$0xff]  ;;  %v924_v50 = vsub.s32 2, %v4145_v55 }
 0x2cb   :  { %2839 = vmatprep.mubr.msk.f32.mxu0 %vm299_vm2, %v4245_v44  ;;  %3556 = vmatpush3.bf16.msra.mxu0 %v3555_v52  ;;  %v944_v44 = vld [vmem:[#allocation2 + $0x30] sm:$0xff]  ;;  %v3534_v16 = vpack.c.bf16 %v958_v11, %v957_v41 }
 0x2cc   :  { %3519 = vmatprep.subr.bf16.mxu1 %v3518_v62  ;;  %3557 = vmatprep.subr.bf16.mxu0 %v3974_v53  ;;  %v3564_v18 = vpack.c.bf16 %v945_v15, %v944_v44  ;;  %v925_v2 = vrot.slane %v4175_v7, %v924_v50  ;;  %v1205_v15 = vld [vmem:[#allocation2 + $0x180] sm:$0xff]  ;;  %v518_v7 = vadd.f32 %v4181_v12, %v4166_v63  ;;  %v1216_v50 = vld [vmem:[#allocation2 + $0x1d8] sm:$0xff] }
 0x2cd   :  { %3521 = vmatpush3.bf16.msra.mxu1 %v3518_v62 }
 0x2ce   :  { %2840 = vmatmul.mubr.msk.f32.gmra.mrb[22].mxu0 %vm299_vm2, %v4278_v54  ;;  %3530 = vmatprep.subr.bf16.mxu1 %v3974_v53  ;;  %v959_v54 = vld [vmem:[#allocation2 + $0xa0] sm:$0xff] }
 0x2cf   :  { %3559 = vmatpush3.bf16.msra.mxu0 %v3558_v4  ;;  %v3537_v21 = vpack.c.bf16 %v960_v17, %v959_v54  ;;  %2909 = vmatprep.mubr.msk.f32.mxu0 %vm3975_vm10, %v3973_v0 }
 0x2d0   :  { %2823 = vmatmul.mubr.msk.f32.vlgmr.msra.gmra.mrb[16].mxu1 %vm299_vm2, %v4225_v38  ;;  %3560 = vmatprep.subr.bf16.mxu0 %v3974_v53  ;;  %v946_v38 = vld [vmem:[#allocation2 + $0x40] sm:$0xff] }
 0x2d1   :  { %2825 = vmatprep.mubr.msk.f32.mxu1 %vm299_vm2, %v4241_v42  ;;  %3532 = vmatpush3.bf16.msra.mxu1 %v3531_v10  ;;  %v961_v42 = vld [vmem:[#allocation2 + $0xb0] sm:$0xff]  ;;  %v3567_v23 = vpack.c.bf16 %v947_v19, %v946_v38  ;;  %v1115_v38 = vld [vmem:[#allocation2 + $0x100] sm:$0xff]  ;;  %v1116_v19 = vld [vmem:[#allocation2 + $0x108] sm:$0xff] }
 0x2d2   :  { %3533 = vmatprep.subr.bf16.mxu1 %v3974_v53  ;;  %v3540_v24 = vpack.c.bf16 %v962_v22, %v961_v42 }
 0x2d3   :  { %3562 = vmatpush3.bf16.msra.mxu0 %v3561_v14 }
 0x2d4   :  { %2826 = vmatmul.mubr.msk.f32.gmra.mrb[18].mxu1 %vm299_vm2, %v4267_v51  ;;  %3563 = vmatprep.subr.bf16.mxu0 %v3974_v53  ;;  %v964_v51 = vld [vmem:[#allocation2 + $0xc8] sm:$0xff] }
 0x2d5   :  { %3535 = vmatpush3.bf16.msra.mxu1 %v3534_v16  ;;  %v3543_v26 = vpack.c.bf16 %v964_v51, %v963_v25  ;;  %2874 = vmatprep.mubr.msk.f32.mxu1 %vm3975_vm10, %v3973_v0  ;;  %v1206_v16 = vld [vmem:[#allocation2 + $0x188] sm:$0xff] }
 0x2d6   :  { %3536 = vmatprep.subr.bf16.mxu1 %v3974_v53  ;;  %v3603_v42 = vpack.c.bf16 %v1206_v16, %v1205_v15  ;;  %v1383_v16 = vld [vmem:[#allocation2 + $0x280] sm:$0xff] }
 0x2d7   :  { %3565 = vmatpush3.bf16.msra.mxu0 %v3564_v18 }
 0x2d8   :  { %3566 = vmatprep.subr.bf16.mxu0 %v3974_v53 }
 0x2d9   :  { %3538 = vmatpush3.bf16.msra.mxu1 %v3537_v21 }
 0x2da   :  { %3539 = vmatprep.subr.bf16.mxu1 %v3974_v53 }
 0x2db   :  { %3568 = vmatpush3.bf16.msra.mxu0 %v3567_v23  ;;  %v1207_v23 = vld [vmem:[#allocation2 + $0x190] sm:$0xff] }
 0x2dc   :  { %3569 = vmatprep.subr.bf16.mxu0 %v3974_v53 }
 0x2dd   :  { %3541 = vmatpush3.bf16.msra.mxu1 %v3540_v24  ;;  %v1208_v24 = vld [vmem:[#allocation2 + $0x198] sm:$0xff] }
 0x2de   :  { %3542 = vmatprep.subr.bf16.mxu1 %v3974_v53  ;;  %v3606_v5 = vpack.c.bf16 %v1208_v24, %v1207_v23  ;;  %v1298_v23 = vld [vmem:[#allocation2 + $0x218] sm:$0xff] }
 0x2df   :  { %3571 = vmatpush3.bf16.msra.mxu0 %v3570_v29 }
 0x2e0   :  { %3572 = vmatprep.subr.bf16.mxu0 %v3974_v53 }
 0x2e1   :  { %3544 = vmatpush3.bf16.msra.mxu1 %v3543_v26  ;;  %v1118_v26 = vld [vmem:[#allocation2 + $0x118] sm:$0xff] }
 0x2e2   :  { %3545 = vmatprep.subr.bf16.mxu1 %v3974_v53 }
 0x2e3   :  { %3574 = vmatpush3.bf16.msra.mxu0 %v3573_v34  ;;  %v1212_v34 = vld [vmem:[#allocation2 + $0x1b8] sm:$0xff] }
 0x2e4   :  { %3575 = vmatprep.subr.bf16.mxu0 %v3974_v53 }
 0x2e5   :  { %3547 = vmatpush3.bf16.msra.mxu1 %v3546_v32 }
 0x2e6   :  { %3548 = vmatprep.subr.bf16.mxu1 %v3974_v53 }
 0x2e7   :  { %3577 = vmatpush3.bf16.msra.mxu0 %v3576_v43  ;;  %v1214_v43 = vld [vmem:[#allocation2 + $0x1c8] sm:$0xff] }
 0x2e8   :  { %3602 = vmatprep.subr.bf16.mxu0 %v3974_v53 }
 0x2e9   :  { %3550 = vmatpush3.bf16.msra.mxu1 %v3549_v37  ;;  %v1122_v37 = vld [vmem:[#allocation2 + $0x138] sm:$0xff] }
 0x2ea   :  { %3551 = vmatprep.subr.bf16.mxu1 %v3974_v53  ;;  %v3588_v46 = vpack.c.bf16 %v1122_v37, %v1121_v36  ;;  %v1393_v37 = vld [vmem:[#allocation2 + $0x2d0] sm:$0xff] }
 0x2ed   :  { %3553 = vmatpush3.bf16.msra.mxu1 %v3552_v47  ;;  %v1124_v47 = vld [vmem:[#allocation2 + $0x148] sm:$0xff] }
 0x2ee   :  { %3578 = vmatprep.subr.bf16.mxu1 %v3974_v53 }
 0x39d   :  { %v2838_v48 = vpop.f32.mrb[20].mxu0 }
 0x39e   :  { %v895_v49 = vpop.f32.mrb[21].mxu0 }
 0x3a1   :  { %v2841_v52 = vpop.f32.mrb[22].mxu0 }
 0x3a2   :  { %v905_v56 = vpop.f32.mrb[23].mxu0 }
 0x3a3   :  { %v2824_v57 = vpop.f32.mrb[16].mxu1 }
 0x3a4   :  { %v915_v60 = vadd.f32 %v2824_v57, %v4396_v45  ;;  %v810_v62 = vpop.f32.mrb[17].mxu1  ;;  %v519_v45 = vadd.f32 %v4181_v12, %v4177_v9  ;;  %v3579_v9 = vpack.c.bf16 %v1116_v19, %v1115_v38  ;;  %v1117_v12 = vld [vmem:[#allocation2 + $0x110] sm:$0xff]  ;;  %v1126_v57 = vld [vmem:[#allocation2 + $0x158] sm:$0xff] }
 0x3a5   :  { %v914_v3 = vadd.f32 %v810_v62, %v4394_v27  ;;  %v3582_v32 = vpack.c.bf16 %v1118_v26, %v1117_v12  ;;  %v1217_v62 = vld [vmem:[#allocation2 + $0x1e0] sm:$0xff]  ;;  %v1385_v38 = vld [vmem:[#allocation2 + $0x290] sm:$0xff]  ;;  %v1386_v19 = vld [vmem:[#allocation2 + $0x298] sm:$0xff] }
 0x3a6   :  { %v919_v4 = vadd.f32 %v2838_v48, %v915_v60  ;;  %v3615_v48 = vpack.c.bf16 %v1214_v43, %v1213_v40  ;;  %v3654_v24 = vpack.c.bf16 %v1386_v19, %v1385_v38  ;;  %v1389_v26 = vld [vmem:[#allocation2 + $0x2b0] sm:$0xff]  ;;  %v1478_v19 = vld [vmem:[#allocation2 + $0x320] sm:$0xff] }
 0x3a7   :  { %v918_v6 = vadd.f32 %v914_v3, %v895_v49  ;;  %v2827_v8 = vpop.f32.mrb[18].mxu1  ;;  %v1215_v49 = vld [vmem:[#allocation2 + $0x1d0] sm:$0xff] }
 0x3a8   :  { %v927_v10 = vadd.f32 %v925_v2, %v919_v4  ;;  %v917_v41 = vadd.f32 %v2827_v8, %v4401_v1  ;;  %v820_v11 = vpop.f32.mrb[19].mxu1  ;;  %v3618_v60 = vpack.c.bf16 %v1216_v50, %v1215_v49  ;;  %v1127_v4 = vld [vmem:[#allocation2 + $0x160] sm:$0xff]  ;;  %v1305_v43 = vld [vmem:[#allocation2 + $0x250] sm:$0xff] }
 0x3a9   :  { %v926_v14 = vadd.f32 %v925_v2, %v918_v6  ;;  %v916_v44 = vadd.f32 %v820_v11, %v4398_v59  ;;  %v1128_v6 = vld [vmem:[#allocation2 + $0x168] sm:$0xff]  ;;  %v1307_v50 = vld [vmem:[#allocation2 + $0x260] sm:$0xff] }
 0x3aa   :  { %v931_v54 = vmax.f32 %v927_v10, 0.0  ;;  %v921_v17 = vadd.f32 %v2841_v52, %v917_v41  ;;  %v3591_v52 = vpack.c.bf16 %v1124_v47, %v1123_v58  ;;  %v1219_v10 = vld [vmem:[#allocation2 + $0x1f0] sm:$0xff]  ;;  %v1220_v41 = vld [vmem:[#allocation2 + $0x1f8] sm:$0xff]  ;;  %v3597_v11 = vpack.c.bf16 %v1128_v6, %v1127_v4  ;;  %v1395_v47 = vld [vmem:[#allocation2 + $0x2e0] sm:$0xff] }
 0x3ab   :  { %v930_v27 = vmax.f32 %v926_v14, 0.0  ;;  %v920_v18 = vadd.f32 %v916_v44, %v905_v56  ;;  %v1125_v56 = vld [vmem:[#allocation2 + $0x150] sm:$0xff]  ;;  %v1130_v44 = vld [vmem:[#allocation2 + $0x178] sm:$0xff]  ;;  %v3624_v15 = vpack.c.bf16 %v1220_v41, %v1219_v10  ;;  %v1564_v6 = vld [vmem:[#allocation2 + $0x380] sm:$0xff] }
 0x3ac   :  { %v4446_v21 = vadd.f32 %v931_v54, %v519_v45  ;;  %v929_v1 = vadd.f32 %v925_v2, %v921_v17  ;;  %v3594_v3 = vpack.c.bf16 %v1126_v57, %v1125_v56  ;;  %v1129_v14 = vld [vmem:[#allocation2 + $0x170] sm:$0xff]  ;;  %v1384_v45 = vld [vmem:[#allocation2 + $0x288] sm:$0xff]  ;;  %v1295_v17 = vld [vmem:[#allocation2 + $0x200] sm:$0xff] }
 0x3ad   :  { %v4448_v22 = vadd.f32 %v930_v27, %v518_v7  ;;  %v928_v59 = vadd.f32 %v925_v2, %v920_v18  ;;  %v1218_v2 = vld [vmem:[#allocation2 + $0x1e8] sm:$0xff]  ;;  %v3600_v54 = vpack.c.bf16 %v1130_v44, %v1129_v14  ;;  %v3651_v27 = vpack.c.bf16 %v1384_v45, %v1383_v16  ;;  %v1397_v57 = vld [vmem:[#allocation2 + $0x2f0] sm:$0xff]  ;;  %v1474_v41 = vld [vmem:[#allocation2 + $0x300] sm:$0xff] }
 0x3ae   :  { %v933_v25 = vmax.f32 %v929_v1, 0.0  ;;  %v3621_v8 = vpack.c.bf16 %v1218_v2, %v1217_v62  ;;  %v1296_v7 = vld [vmem:[#allocation2 + $0x208] sm:$0xff]  ;;  %v1309_v2 = vld [vmem:[#allocation2 + $0x270] sm:$0xff]  ;;  %v1400_v44 = vrot.slane %v4446_v21, 2  ;;  %v1567_v16 = vld [vmem:[#allocation2 + $0x398] sm:$0xff] }
 0x3af   :  { %v932_v51 = vmax.f32 %v928_v59, 0.0  ;;  %2910 = vmatmul.mubr.f32.vlgmr.msra.gmra.mrb[24].mxu0 %v4448_v22  ;;  %v972_v63 = vrot.slane %v4448_v22, 2  ;;  %v1221_v18 = vrot.slane %v4448_v22, 6  ;;  %v3627_v1 = vpack.c.bf16 %v1296_v7, %v1295_v17  ;;  %v1297_v59 = vld [vmem:[#allocation2 + $0x210] sm:$0xff]  ;;  %v1477_v17 = vld [vmem:[#allocation2 + $0x318] sm:$0xff] }
 0x3b0   :  { %v4453_v28 = vadd.f32 %v933_v25, %v4213_v35  ;;  %3604 = vmatpush3.bf16.msra.mxu0 %v3603_v42  ;;  %2979 = vmatprep.mubr.msk.f32.mxu0 %vm3975_vm10, %v3973_v0  ;;  %v1119_v35 = vld [vmem:[#allocation2 + $0x120] sm:$0xff]  ;;  %v1131_v42 = vrot.slane %v4448_v22, 4 }
 0x3b1   :  { %v4458_v29 = vadd.f32 %v932_v51, %v4193_v20  ;;  %2875 = vmatmul.mubr.f32.vlgmr.msra.gmra.mrb[20].mxu1 %v972_v63  ;;  %3605 = vmatprep.subr.bf16.mxu0 %v3974_v53  ;;  %v1211_v20 = vld [vmem:[#allocation2 + $0x1b0] sm:$0xff]  ;;  %v3585_v13 = vpack.c.bf16 %v1120_v33, %v1119_v35  ;;  %v1387_v25 = vld [vmem:[#allocation2 + $0x2a0] sm:$0xff]  ;;  %v3630_v51 = vpack.c.bf16 %v1298_v23, %v1297_v59  ;;  %v1300_v63 = vld [vmem:[#allocation2 + $0x228] sm:$0xff] }
 0x3b2   :  { %3580 = vmatpush3.bf16.msra.mxu1 %v3579_v9  ;;  %2944 = vmatprep.mubr.msk.f32.mxu1 %vm3975_vm10, %v3973_v0  ;;  %v3612_v39 = vpack.c.bf16 %v1212_v34, %v1211_v20  ;;  %v1388_v9 = vld [vmem:[#allocation2 + $0x2a8] sm:$0xff]  ;;  %v1299_v22 = vld [vmem:[#allocation2 + $0x220] sm:$0xff]  ;;  %v1570_v59 = vld [vmem:[#allocation2 + $0x3b0] sm:$0xff] }
 0x3b3   :  { %3581 = vmatprep.subr.bf16.mxu1 %v3974_v53  ;;  %v3657_v12 = vpack.c.bf16 %v1388_v9, %v1387_v25  ;;  %v3633_v30 = vpack.c.bf16 %v1300_v63, %v1299_v22  ;;  %v1391_v33 = vld [vmem:[#allocation2 + $0x2c0] sm:$0xff]  ;;  %v1571_v23 = vld [vmem:[#allocation2 + $0x3b8] sm:$0xff]  ;;  %v1480_v25 = vld [vmem:[#allocation2 + $0x330] sm:$0xff] }
 0x3b4   :  { %3607 = vmatpush3.bf16.msra.mxu0 %v3606_v5  ;;  %v1390_v5 = vld [vmem:[#allocation2 + $0x2b8] sm:$0xff]  ;;  %v1303_v34 = vld [vmem:[#allocation2 + $0x240] sm:$0xff]  ;;  %v1573_v63 = vld [vmem:[#allocation2 + $0x3c8] sm:$0xff] }
 0x3b5   :  { %3608 = vmatprep.subr.bf16.mxu0 %v3974_v53  ;;  %v3660_v35 = vpack.c.bf16 %v1390_v5, %v1389_v26  ;;  %v1481_v9 = vld [vmem:[#allocation2 + $0x338] sm:$0xff]  ;;  %v1572_v22 = vld [vmem:[#allocation2 + $0x3c0] sm:$0xff]  ;;  %v1483_v5 = vld [vmem:[#allocation2 + $0x348] sm:$0xff] }
 0x3b6   :  { %3583 = vmatpush3.bf16.msra.mxu1 %v3582_v32  ;;  %v1302_v32 = vld [vmem:[#allocation2 + $0x238] sm:$0xff]  ;;  %v1482_v26 = vld [vmem:[#allocation2 + $0x340] sm:$0xff] }
 0x3b7   :  { %3584 = vmatprep.subr.bf16.mxu1 %v3974_v53  ;;  %v3636_v20 = vpack.c.bf16 %v1302_v32, %v1301_v31  ;;  %v1574_v31 = vld [vmem:[#allocation2 + $0x3d0] sm:$0xff]  ;;  %v1575_v32 = vld [vmem:[#allocation2 + $0x3d8] sm:$0xff] }
 0x3b8   :  { %3610 = vmatpush3.bf16.msra.mxu0 %v3609_v61  ;;  %v1392_v61 = vld [vmem:[#allocation2 + $0x2c8] sm:$0xff] }
 0x3b9   :  { %3611 = vmatprep.subr.bf16.mxu0 %v3974_v53  ;;  %v3663_v36 = vpack.c.bf16 %v1392_v61, %v1391_v33  ;;  %v1484_v33 = vld [vmem:[#allocation2 + $0x350] sm:$0xff]  ;;  %v1485_v61 = vld [vmem:[#allocation2 + $0x358] sm:$0xff] }
 0x3ba   :  { %3586 = vmatpush3.bf16.msra.mxu1 %v3585_v13  ;;  %v1304_v13 = vld [vmem:[#allocation2 + $0x248] sm:$0xff] }
 0x3bb   :  { %3587 = vmatprep.subr.bf16.mxu1 %v3974_v53  ;;  %v3639_v40 = vpack.c.bf16 %v1304_v13, %v1303_v34  ;;  %v1576_v34 = vld [vmem:[#allocation2 + $0x3e0] sm:$0xff]  ;;  %v1577_v13 = vld [vmem:[#allocation2 + $0x3e8] sm:$0xff] }
 0x3bc   :  { %3613 = vmatpush3.bf16.msra.mxu0 %v3612_v39  ;;  %v1394_v39 = vld [vmem:[#allocation2 + $0x2d8] sm:$0xff] }
 0x3bd   :  { %3614 = vmatprep.subr.bf16.mxu0 %v3974_v53  ;;  %v3666_v58 = vpack.c.bf16 %v1394_v39, %v1393_v37  ;;  %v1486_v37 = vld [vmem:[#allocation2 + $0x360] sm:$0xff]  ;;  %v1487_v39 = vld [vmem:[#allocation2 + $0x368] sm:$0xff] }
 0x3be   :  { %3589 = vmatpush3.bf16.msra.mxu1 %v3588_v46  ;;  %v1306_v46 = vld [vmem:[#allocation2 + $0x258] sm:$0xff] }
 0x3bf   :  { %3590 = vmatprep.subr.bf16.mxu1 %v3974_v53  ;;  %v3642_v49 = vpack.c.bf16 %v1306_v46, %v1305_v43  ;;  %v1578_v43 = vld [vmem:[#allocation2 + $0x3f0] sm:$0xff]  ;;  %v1579_v46 = vld [vmem:[#allocation2 + $0x3f8] sm:$0xff] }
 0x3c0   :  { %3616 = vmatpush3.bf16.msra.mxu0 %v3615_v48  ;;  %v1396_v48 = vld [vmem:[#allocation2 + $0x2e8] sm:$0xff] }
 0x3c1   :  { %3617 = vmatprep.subr.bf16.mxu0 %v3974_v53  ;;  %v3669_v56 = vpack.c.bf16 %v1396_v48, %v1395_v47  ;;  %v1488_v47 = vld [vmem:[#allocation2 + $0x370] sm:$0xff]  ;;  %v1489_v48 = vld [vmem:[#allocation2 + $0x378] sm:$0xff] }
 0x3c2   :  { %3592 = vmatpush3.bf16.msra.mxu1 %v3591_v52  ;;  %v1308_v52 = vld [vmem:[#allocation2 + $0x268] sm:$0xff] }
 0x3c3   :  { %3593 = vmatprep.subr.bf16.mxu1 %v3974_v53  ;;  %v3645_v62 = vpack.c.bf16 %v1308_v52, %v1307_v50  ;;  %v1742_v50 = vld [vmem:[#allocation2 + $0x480] sm:$0xff]  ;;  %v1743_v52 = vld [vmem:[#allocation2 + $0x488] sm:$0xff] }
 0x3c4   :  { %3619 = vmatpush3.bf16.msra.mxu0 %v3618_v60  ;;  %v1398_v60 = vld [vmem:[#allocation2 + $0x2f8] sm:$0xff] }
 0x3c5   :  { %3620 = vmatprep.subr.bf16.mxu0 %v3974_v53  ;;  %v3672_v4 = vpack.c.bf16 %v1398_v60, %v1397_v57  ;;  %v1654_v57 = vld [vmem:[#allocation2 + $0x400] sm:$0xff]  ;;  %v1655_v60 = vld [vmem:[#allocation2 + $0x408] sm:$0xff] }
 0x3c6   :  { %3595 = vmatpush3.bf16.msra.mxu1 %v3594_v3  ;;  %v1310_v3 = vld [vmem:[#allocation2 + $0x278] sm:$0xff] }
 0x3c7   :  { %3596 = vmatprep.subr.bf16.mxu1 %v3974_v53  ;;  %v3648_v10 = vpack.c.bf16 %v1310_v3, %v1309_v2  ;;  %v1580_v2 = vrot.slane %v4446_v21, 6  ;;  %v1744_v3 = vld [vmem:[#allocation2 + $0x490] sm:$0xff] }
 0x3c8   :  { %3622 = vmatpush3.bf16.msra.mxu0 %v3621_v8  ;;  %v1565_v8 = vld [vmem:[#allocation2 + $0x388] sm:$0xff] }
 0x3c9   :  { %3623 = vmatprep.subr.bf16.mxu0 %v3974_v53  ;;  %v3699_v14 = vpack.c.bf16 %v1565_v8, %v1564_v6  ;;  %v3723_v6 = vpack.c.bf16 %v1655_v60, %v1654_v57  ;;  %v1490_v8 = vrot.slane %v4446_v21, 4  ;;  %v1927_v60 = vld [vmem:[#allocation2 + $0x5a0] sm:$0xff] }
 0x3ca   :  { %3598 = vmatpush3.bf16.msra.mxu1 %v3597_v11  ;;  %v1475_v11 = vld [vmem:[#allocation2 + $0x308] sm:$0xff] }
 0x3cb   :  { %3599 = vmatprep.subr.bf16.mxu1 %v3974_v53  ;;  %v3675_v45 = vpack.c.bf16 %v1475_v11, %v1474_v41  ;;  %v1657_v41 = vld [vmem:[#allocation2 + $0x418] sm:$0xff] }
 0x3cc   :  { %3625 = vmatpush3.bf16.msra.mxu0 %v3624_v15  ;;  %v1566_v15 = vld [vmem:[#allocation2 + $0x390] sm:$0xff] }
 0x3cd   :  { %3650 = vmatprep.subr.bf16.mxu0 %v3974_v53  ;;  %v3702_v7 = vpack.c.bf16 %v1567_v16, %v1566_v15  ;;  %v1659_v16 = vld [vmem:[#allocation2 + $0x428] sm:$0xff] }
 0x3ce   :  { %3601 = vmatpush3.bf16.msra.mxu1 %v3600_v54  ;;  %v1476_v54 = vld [vmem:[#allocation2 + $0x310] sm:$0xff] }
 0x3cf   :  { %2980 = vmatmul.mubr.f32.vlgmr.msra.gmra.mrb[26].mxu0 %v1221_v18  ;;  %3626 = vmatprep.subr.bf16.mxu1 %v3974_v53  ;;  %v1569_v18 = vld [vmem:[#allocation2 + $0x3a8] sm:$0xff]  ;;  %v3678_v38 = vpack.c.bf16 %v1477_v17, %v1476_v54  ;;  %v1748_v54 = vld [vmem:[#allocation2 + $0x4b0] sm:$0xff]  ;;  %v1749_v17 = vld [vmem:[#allocation2 + $0x4b8] sm:$0xff] }
 0x3d0   :  { %3652 = vmatpush3.bf16.msra.mxu0 %v3651_v27  ;;  %3049 = vmatprep.mubr.msk.f32.mxu0 %vm3975_vm10, %v3973_v0  ;;  %v1568_v27 = vld [vmem:[#allocation2 + $0x3a0] sm:$0xff] }
 0x3d1   :  { %2945 = vmatmul.mubr.f32.vlgmr.msra.gmra.mrb[22].mxu1 %v1131_v42  ;;  %3653 = vmatprep.subr.bf16.mxu0 %v3974_v53  ;;  %v3705_v42 = vpack.c.bf16 %v1569_v18, %v1568_v27  ;;  %v1660_v27 = vld [vmem:[#allocation2 + $0x430] sm:$0xff]  ;;  %v1661_v18 = vld [vmem:[#allocation2 + $0x438] sm:$0xff] }
 0x3d2   :  { %3628 = vmatpush3.bf16.msra.mxu1 %v3627_v1  ;;  %3014 = vmatprep.mubr.msk.f32.mxu1 %vm3975_vm10, %v3973_v0  ;;  %v1479_v1 = vld [vmem:[#allocation2 + $0x328] sm:$0xff] }
 0x3d3   :  { %3629 = vmatprep.subr.bf16.mxu1 %v3974_v53 }
 0x3d4   :  { %3655 = vmatpush3.bf16.msra.mxu0 %v3654_v24  ;;  %v3681_v24 = vpack.c.bf16 %v1479_v1, %v1478_v19  ;;  %v1750_v19 = vld [vmem:[#allocation2 + $0x4c0] sm:$0xff]  ;;  %v1751_v1 = vld [vmem:[#allocation2 + $0x4c8] sm:$0xff] }
 0x3d5   :  { %3656 = vmatprep.subr.bf16.mxu0 %v3974_v53 }
 0x3d6   :  { %3631 = vmatpush3.bf16.msra.mxu1 %v3630_v51  ;;  %v3708_v51 = vpack.c.bf16 %v1571_v23, %v1570_v59  ;;  %v1662_v59 = vld [vmem:[#allocation2 + $0x440] sm:$0xff]  ;;  %v1663_v23 = vld [vmem:[#allocation2 + $0x448] sm:$0xff] }
 0x3d7   :  { %3632 = vmatprep.subr.bf16.mxu1 %v3974_v53 }
 0x3d8   :  { %3658 = vmatpush3.bf16.msra.mxu0 %v3657_v12  ;;  %v3684_v12 = vpack.c.bf16 %v1481_v9, %v1480_v25  ;;  %v1752_v25 = vld [vmem:[#allocation2 + $0x4d0] sm:$0xff]  ;;  %v1753_v9 = vld [vmem:[#allocation2 + $0x4d8] sm:$0xff] }
 0x3d9   :  { %3659 = vmatprep.subr.bf16.mxu0 %v3974_v53 }
 0x3da   :  { %3634 = vmatpush3.bf16.msra.mxu1 %v3633_v30  ;;  %v3711_v30 = vpack.c.bf16 %v1573_v63, %v1572_v22  ;;  %v1664_v22 = vld [vmem:[#allocation2 + $0x450] sm:$0xff]  ;;  %v1665_v63 = vld [vmem:[#allocation2 + $0x458] sm:$0xff] }
 0x3db   :  { %3635 = vmatprep.subr.bf16.mxu1 %v3974_v53 }
 0x3dc   :  { %3661 = vmatpush3.bf16.msra.mxu0 %v3660_v35  ;;  %v3687_v35 = vpack.c.bf16 %v1483_v5, %v1482_v26  ;;  %v1754_v26 = vld [vmem:[#allocation2 + $0x4e0] sm:$0xff]  ;;  %v1755_v5 = vld [vmem:[#allocation2 + $0x4e8] sm:$0xff] }
 0x3dd   :  { %3662 = vmatprep.subr.bf16.mxu0 %v3974_v53 }
 0x3de   :  { %3637 = vmatpush3.bf16.msra.mxu1 %v3636_v20  ;;  %v3714_v20 = vpack.c.bf16 %v1575_v32, %v1574_v31  ;;  %v1666_v31 = vld [vmem:[#allocation2 + $0x460] sm:$0xff]  ;;  %v1667_v32 = vld [vmem:[#allocation2 + $0x468] sm:$0xff] }
 0x3df   :  { %3638 = vmatprep.subr.bf16.mxu1 %v3974_v53 }
 0x3e0   :  { %3664 = vmatpush3.bf16.msra.mxu0 %v3663_v36  ;;  %v3690_v36 = vpack.c.bf16 %v1485_v61, %v1484_v33  ;;  %v1756_v33 = vld [vmem:[#allocation2 + $0x4f0] sm:$0xff]  ;;  %v1757_v61 = vld [vmem:[#allocation2 + $0x4f8] sm:$0xff] }
 0x3e1   :  { %3665 = vmatprep.subr.bf16.mxu0 %v3974_v53 }
 0x3e2   :  { %3640 = vmatpush3.bf16.msra.mxu1 %v3639_v40  ;;  %v3717_v40 = vpack.c.bf16 %v1577_v13, %v1576_v34  ;;  %v1668_v34 = vld [vmem:[#allocation2 + $0x470] sm:$0xff]  ;;  %v1669_v13 = vld [vmem:[#allocation2 + $0x478] sm:$0xff] }
 0x3e3   :  { %3641 = vmatprep.subr.bf16.mxu1 %v3974_v53 }
 0x3e4   :  { %3667 = vmatpush3.bf16.msra.mxu0 %v3666_v58  ;;  %v3693_v58 = vpack.c.bf16 %v1487_v39, %v1486_v37  ;;  %v1923_v37 = vld [vmem:[#allocation2 + $0x580] sm:$0xff]  ;;  %v1924_v39 = vld [vmem:[#allocation2 + $0x588] sm:$0xff] }
 0x3e5   :  { %3668 = vmatprep.subr.bf16.mxu0 %v3974_v53 }
 0x3e6   :  { %3643 = vmatpush3.bf16.msra.mxu1 %v3642_v49  ;;  %v3720_v49 = vpack.c.bf16 %v1579_v46, %v1578_v43  ;;  %v1833_v43 = vld [vmem:[#allocation2 + $0x500] sm:$0xff]  ;;  %v1834_v46 = vld [vmem:[#allocation2 + $0x508] sm:$0xff] }
 0x3e7   :  { %3644 = vmatprep.subr.bf16.mxu1 %v3974_v53 }
 0x3e8   :  { %3670 = vmatpush3.bf16.msra.mxu0 %v3669_v56  ;;  %v3696_v56 = vpack.c.bf16 %v1489_v48, %v1488_v47  ;;  %v1759_v47 = vrot.slane %v4458_v29, 2  ;;  %v1925_v48 = vld [vmem:[#allocation2 + $0x590] sm:$0xff] }
 0x3e9   :  { %3671 = vmatprep.subr.bf16.mxu0 %v3974_v53 }
 0x3ea   :  { %3646 = vmatpush3.bf16.msra.mxu1 %v3645_v62  ;;  %v3747_v62 = vpack.c.bf16 %v1743_v52, %v1742_v50  ;;  %v3771_v50 = vpack.c.bf16 %v1834_v46, %v1833_v43  ;;  %v1835_v52 = vld [vmem:[#allocation2 + $0x510] sm:$0xff]  ;;  %v2105_v46 = vld [vmem:[#allocation2 + $0x6a0] sm:$0xff] }
 0x3eb   :  { %3647 = vmatprep.subr.bf16.mxu1 %v3974_v53 }
 0x3ec   :  { %3673 = vmatpush3.bf16.msra.mxu0 %v3672_v4  ;;  %v1745_v4 = vld [vmem:[#allocation2 + $0x498] sm:$0xff] }
 0x3ed   :  { %3698 = vmatprep.subr.bf16.mxu0 %v3974_v53  ;;  %v3750_v11 = vpack.c.bf16 %v1745_v4, %v1744_v3  ;;  %v1837_v3 = vld [vmem:[#allocation2 + $0x520] sm:$0xff]  ;;  %v1838_v4 = vld [vmem:[#allocation2 + $0x528] sm:$0xff] }
 0x3ee   :  { %3649 = vmatpush3.bf16.msra.mxu1 %v3648_v10  ;;  %v1656_v10 = vld [vmem:[#allocation2 + $0x410] sm:$0xff] }
 0x3ef   :  { %3050 = vmatmul.mubr.f32.vlgmr.msra.gmra.mrb[28].mxu0 %v1400_v44  ;;  %3674 = vmatprep.subr.bf16.mxu1 %v3974_v53  ;;  %v1747_v44 = vld [vmem:[#allocation2 + $0x4a8] sm:$0xff]  ;;  %v3726_v15 = vpack.c.bf16 %v1657_v41, %v1656_v10  ;;  %v1930_v10 = vld [vmem:[#allocation2 + $0x5b8] sm:$0xff]  ;;  %v3777_v41 = vpack.c.bf16 %v1838_v4, %v1837_v3 }
 0x3f0   :  { %3700 = vmatpush3.bf16.msra.mxu0 %v3699_v14  ;;  %3119 = vmatprep.mubr.msk.f32.mxu0 %vm3975_vm10, %v3973_v0  ;;  %v1746_v14 = vld [vmem:[#allocation2 + $0x4a0] sm:$0xff]  ;;  %v2110_v3 = vld [vmem:[#allocation2 + $0x6c8] sm:$0xff] }
 0x3f1   :  { %3015 = vmatmul.mubr.f32.vlgmr.msra.gmra.mrb[24].mxu1 %v4446_v21  ;;  %3701 = vmatprep.subr.bf16.mxu0 %v3974_v53  ;;  %v1658_v21 = vld [vmem:[#allocation2 + $0x420] sm:$0xff] }
 0x3f2   :  { %3676 = vmatpush3.bf16.msra.mxu1 %v3675_v45  ;;  %3084 = vmatprep.mubr.msk.f32.mxu1 %vm3975_vm10, %v3973_v0  ;;  %v3753_v45 = vpack.c.bf16 %v1747_v44, %v1746_v14  ;;  %v1840_v14 = vld [vmem:[#allocation2 + $0x538] sm:$0xff] }
 0x3f3   :  { %3677 = vmatprep.subr.bf16.mxu1 %v3974_v53 }
 0x3f4   :  { %3703 = vmatpush3.bf16.msra.mxu0 %v3702_v7  ;;  %v3729_v7 = vpack.c.bf16 %v1659_v16, %v1658_v21  ;;  %v1932_v21 = vld [vmem:[#allocation2 + $0x5c8] sm:$0xff] }
 0x3f5   :  { %3704 = vmatprep.subr.bf16.mxu0 %v3974_v53 }
 0x3f6   :  { %3679 = vmatpush3.bf16.msra.mxu1 %v3678_v38  ;;  %v3756_v38 = vpack.c.bf16 %v1749_v17, %v1748_v54  ;;  %v1842_v54 = vld [vmem:[#allocation2 + $0x548] sm:$0xff] }
 0x3f7   :  { %3680 = vmatprep.subr.bf16.mxu1 %v3974_v53 }
 0x3f8   :  { %3706 = vmatpush3.bf16.msra.mxu0 %v3705_v42  ;;  %v3732_v42 = vpack.c.bf16 %v1661_v18, %v1660_v27  ;;  %v1934_v27 = vld [vmem:[#allocation2 + $0x5d8] sm:$0xff] }
 0x3f9   :  { %3707 = vmatprep.subr.bf16.mxu0 %v3974_v53 }
 0x3fa   :  { %3682 = vmatpush3.bf16.msra.mxu1 %v3681_v24  ;;  %v3759_v24 = vpack.c.bf16 %v1751_v1, %v1750_v19  ;;  %v1844_v19 = vld [vmem:[#allocation2 + $0x558] sm:$0xff] }
 0x3fb   :  { %3683 = vmatprep.subr.bf16.mxu1 %v3974_v53 }
 0x3fc   :  { %3709 = vmatpush3.bf16.msra.mxu0 %v3708_v51  ;;  %v3735_v51 = vpack.c.bf16 %v1663_v23, %v1662_v59  ;;  %v1936_v59 = vld [vmem:[#allocation2 + $0x5e8] sm:$0xff] }
 0x3fd   :  { %3710 = vmatprep.subr.bf16.mxu0 %v3974_v53 }
 0x3fe   :  { %3685 = vmatpush3.bf16.msra.mxu1 %v3684_v12  ;;  %v3762_v12 = vpack.c.bf16 %v1753_v9, %v1752_v25  ;;  %v1846_v25 = vld [vmem:[#allocation2 + $0x568] sm:$0xff] }
 0x3ff   :  { %3686 = vmatprep.subr.bf16.mxu1 %v3974_v53 }
 0x400   :  { %3712 = vmatpush3.bf16.msra.mxu0 %v3711_v30  ;;  %v3738_v30 = vpack.c.bf16 %v1665_v63, %v1664_v22  ;;  %v1938_v22 = vld [vmem:[#allocation2 + $0x5f8] sm:$0xff] }
 0x401   :  { %3713 = vmatprep.subr.bf16.mxu0 %v3974_v53 }
 0x402   :  { %3688 = vmatpush3.bf16.msra.mxu1 %v3687_v35  ;;  %v3765_v35 = vpack.c.bf16 %v1755_v5, %v1754_v26  ;;  %v1848_v26 = vld [vmem:[#allocation2 + $0x578] sm:$0xff] }
 0x403   :  { %3689 = vmatprep.subr.bf16.mxu1 %v3974_v53 }
 0x404   :  { %3715 = vmatpush3.bf16.msra.mxu0 %v3714_v20  ;;  %v3741_v20 = vpack.c.bf16 %v1667_v32, %v1666_v31  ;;  %v2102_v31 = vld [vmem:[#allocation2 + $0x688] sm:$0xff] }
 0x405   :  { %3716 = vmatprep.subr.bf16.mxu0 %v3974_v53 }
 0x406   :  { %3691 = vmatpush3.bf16.msra.mxu1 %v3690_v36  ;;  %v3768_v36 = vpack.c.bf16 %v1757_v61, %v1756_v33  ;;  %v2014_v33 = vld [vmem:[#allocation2 + $0x608] sm:$0xff] }
 0x407   :  { %3692 = vmatprep.subr.bf16.mxu1 %v3974_v53 }
 0x408   :  { %3718 = vmatpush3.bf16.msra.mxu0 %v3717_v40  ;;  %v3744_v40 = vpack.c.bf16 %v1669_v13, %v1668_v34  ;;  %v2103_v34 = vld [vmem:[#allocation2 + $0x690] sm:$0xff]  ;;  %v2104_v13 = vld [vmem:[#allocation2 + $0x698] sm:$0xff] }
 0x409   :  { %3719 = vmatprep.subr.bf16.mxu0 %v3974_v53  ;;  %v3846_v43 = vpack.c.bf16 %v2104_v13, %v2103_v34  ;;  %v2197_v34 = vld [vmem:[#allocation2 + $0x728] sm:$0xff] }
 0x40a   :  { %3694 = vmatpush3.bf16.msra.mxu1 %v3693_v58  ;;  %v3795_v58 = vpack.c.bf16 %v1924_v39, %v1923_v37  ;;  %v1849_v37 = vrot.slane %v4458_v29, 4  ;;  %v2015_v39 = vld [vmem:[#allocation2 + $0x610] sm:$0xff] }
 0x40b   :  { %3695 = vmatprep.subr.bf16.mxu1 %v3974_v53 }
 0x40c   :  { %3721 = vmatpush3.bf16.msra.mxu0 %v3720_v49  ;;  %v1926_v49 = vld [vmem:[#allocation2 + $0x598] sm:$0xff] }
 0x40d   :  { %3746 = vmatprep.subr.bf16.mxu0 %v3974_v53  ;;  %v3798_v57 = vpack.c.bf16 %v1926_v49, %v1925_v48  ;;  %v2018_v48 = vld [vmem:[#allocation2 + $0x628] sm:$0xff] }
 0x40e   :  { %3697 = vmatpush3.bf16.msra.mxu1 %v3696_v56  ;;  %v1836_v56 = vld [vmem:[#allocation2 + $0x518] sm:$0xff] }
 0x40f   :  { %3120 = vmatmul.mubr.f32.vlgmr.msra.gmra.mrb[30].mxu0 %v1580_v2  ;;  %3722 = vmatprep.subr.bf16.mxu1 %v3974_v53  ;;  %v3774_v2 = vpack.c.bf16 %v1836_v56, %v1835_v52  ;;  %v2108_v52 = vld [vmem:[#allocation2 + $0x6b8] sm:$0xff] }
 0x410   :  { %3748 = vmatpush3.bf16.msra.mxu0 %v3747_v62  ;;  %3189 = vmatprep.mubr.msk.f32.mxu0 %vm3975_vm10, %v3973_v0  ;;  %v1928_v62 = vld [vmem:[#allocation2 + $0x5a8] sm:$0xff] }
 0x411   :  { %3085 = vmatmul.mubr.f32.vlgmr.msra.gmra.mrb[26].mxu1 %v1490_v8  ;;  %3749 = vmatprep.subr.bf16.mxu0 %v3974_v53  ;;  %v1929_v8 = vld [vmem:[#allocation2 + $0x5b0] sm:$0xff] }
 0x412   :  { %3724 = vmatpush3.bf16.msra.mxu1 %v3723_v6  ;;  %3154 = vmatprep.mubr.msk.f32.mxu1 %vm3975_vm10, %v3973_v0  ;;  %v3801_v6 = vpack.c.bf16 %v1928_v62, %v1927_v60  ;;  %v3804_v44 = vpack.c.bf16 %v1930_v10, %v1929_v8  ;;  %v2020_v60 = vld [vmem:[#allocation2 + $0x638] sm:$0xff]  ;;  %v2022_v8 = vld [vmem:[#allocation2 + $0x648] sm:$0xff] }
 0x413   :  { %3725 = vmatprep.subr.bf16.mxu1 %v3974_v53 }
 0x414   :  { %3751 = vmatpush3.bf16.msra.mxu0 %v3750_v11  ;;  %v1839_v11 = vld [vmem:[#allocation2 + $0x530] sm:$0xff] }
 0x415   :  { %3752 = vmatprep.subr.bf16.mxu0 %v3974_v53  ;;  %v3780_v16 = vpack.c.bf16 %v1840_v14, %v1839_v11  ;;  %v2112_v11 = vld [vmem:[#allocation2 + $0x6d8] sm:$0xff] }
 0x416   :  { %3727 = vmatpush3.bf16.msra.mxu1 %v3726_v15  ;;  %v1931_v15 = vld [vmem:[#allocation2 + $0x5c0] sm:$0xff] }
 0x417   :  { %3728 = vmatprep.subr.bf16.mxu1 %v3974_v53  ;;  %v3807_v17 = vpack.c.bf16 %v1932_v21, %v1931_v15  ;;  %v2024_v15 = vld [vmem:[#allocation2 + $0x658] sm:$0xff] }
 0x418   :  { %3754 = vmatpush3.bf16.msra.mxu0 %v3753_v45  ;;  %v1841_v45 = vld [vmem:[#allocation2 + $0x540] sm:$0xff] }
 0x419   :  { %3755 = vmatprep.subr.bf16.mxu0 %v3974_v53  ;;  %v3783_v18 = vpack.c.bf16 %v1842_v54, %v1841_v45  ;;  %v2114_v45 = vld [vmem:[#allocation2 + $0x6e8] sm:$0xff] }
 0x41a   :  { %3730 = vmatpush3.bf16.msra.mxu1 %v3729_v7  ;;  %v1933_v7 = vld [vmem:[#allocation2 + $0x5d0] sm:$0xff] }
 0x41b   :  { %3731 = vmatprep.subr.bf16.mxu1 %v3974_v53  ;;  %v3810_v1 = vpack.c.bf16 %v1934_v27, %v1933_v7  ;;  %v2026_v7 = vld [vmem:[#allocation2 + $0x668] sm:$0xff] }
 0x41c   :  { %3757 = vmatpush3.bf16.msra.mxu0 %v3756_v38  ;;  %v1843_v38 = vld [vmem:[#allocation2 + $0x550] sm:$0xff] }
 0x41d   :  { %3758 = vmatprep.subr.bf16.mxu0 %v3974_v53  ;;  %v3786_v23 = vpack.c.bf16 %v1844_v19, %v1843_v38  ;;  %v2116_v38 = vld [vmem:[#allocation2 + $0x6f8] sm:$0xff] }
 0x41e   :  { %3733 = vmatpush3.bf16.msra.mxu1 %v3732_v42  ;;  %v1935_v42 = vld [vmem:[#allocation2 + $0x5e0] sm:$0xff] }
 0x41f   :  { %3734 = vmatprep.subr.bf16.mxu1 %v3974_v53  ;;  %v3813_v9 = vpack.c.bf16 %v1936_v59, %v1935_v42  ;;  %v2028_v42 = vld [vmem:[#allocation2 + $0x678] sm:$0xff] }
 0x420   :  { %3760 = vmatpush3.bf16.msra.mxu0 %v3759_v24  ;;  %v1845_v24 = vld [vmem:[#allocation2 + $0x560] sm:$0xff] }
 0x421   :  { %3761 = vmatprep.subr.bf16.mxu0 %v3974_v53  ;;  %v3789_v63 = vpack.c.bf16 %v1846_v25, %v1845_v24  ;;  %v2283_v24 = vld [vmem:[#allocation2 + $0x788] sm:$0xff] }
 0x422   :  { %3736 = vmatpush3.bf16.msra.mxu1 %v3735_v51  ;;  %v1937_v51 = vld [vmem:[#allocation2 + $0x5f0] sm:$0xff] }
 0x423   :  { %3737 = vmatprep.subr.bf16.mxu1 %v3974_v53  ;;  %v3816_v5 = vpack.c.bf16 %v1938_v22, %v1937_v51  ;;  %v2193_v51 = vld [vmem:[#allocation2 + $0x708] sm:$0xff] }
 0x424   :  { %3763 = vmatpush3.bf16.msra.mxu0 %v3762_v12  ;;  %v1847_v12 = vld [vmem:[#allocation2 + $0x570] sm:$0xff] }
 0x425   :  { %3764 = vmatprep.subr.bf16.mxu0 %v3974_v53  ;;  %v3792_v32 = vpack.c.bf16 %v1848_v26, %v1847_v12  ;;  %v2284_v12 = vld [vmem:[#allocation2 + $0x790] sm:$0xff]  ;;  %v2285_v26 = vld [vmem:[#allocation2 + $0x798] sm:$0xff] }
 0x426   :  { %3739 = vmatpush3.bf16.msra.mxu1 %v3738_v30  ;;  %v2101_v30 = vld [vmem:[#allocation2 + $0x680] sm:$0xff] }
 0x427   :  { %3740 = vmatprep.subr.bf16.mxu1 %v3974_v53  ;;  %v3843_v61 = vpack.c.bf16 %v2102_v31, %v2101_v30  ;;  %v2194_v30 = vld [vmem:[#allocation2 + $0x710] sm:$0xff]  ;;  %v2195_v31 = vld [vmem:[#allocation2 + $0x718] sm:$0xff] }
 0x428   :  { %3766 = vmatpush3.bf16.msra.mxu0 %v3765_v35  ;;  %v2013_v35 = vld [vmem:[#allocation2 + $0x600] sm:$0xff] }
 0x429   :  { %3767 = vmatprep.subr.bf16.mxu0 %v3974_v53 }
 0x42a   :  { %3742 = vmatpush3.bf16.msra.mxu1 %v3741_v20  ;;  %v1939_v20 = vrot.slane %v4458_v29, 6 }
 0x42b   :  { %3743 = vmatprep.subr.bf16.mxu1 %v3974_v53 }
 0x42c   :  { %3769 = vmatpush3.bf16.msra.mxu0 %v3768_v36  ;;  %v3819_v36 = vpack.c.bf16 %v2014_v33, %v2013_v35  ;;  %v2286_v35 = vld [vmem:[#allocation2 + $0x7a0] sm:$0xff]  ;;  %v2287_v33 = vld [vmem:[#allocation2 + $0x7a8] sm:$0xff] }
 0x42d   :  { %3794 = vmatprep.subr.bf16.mxu0 %v3974_v53  ;;  %v3897_v13 = vpack.c.bf16 %v2287_v33, %v2286_v35 }
 0x42e   :  { %3745 = vmatpush3.bf16.msra.mxu1 %v3744_v40  ;;  %v2016_v40 = vld [vmem:[#allocation2 + $0x618] sm:$0xff] }
 0x42f   :  { %3190 = vmatmul.mubr.f32.vlgmr.msra.gmra.mrb[32].mxu0 %v1759_v47  ;;  %3770 = vmatprep.subr.bf16.mxu1 %v3974_v53  ;;  %v3822_v47 = vpack.c.bf16 %v2016_v40, %v2015_v39  ;;  %v2198_v40 = vld [vmem:[#allocation2 + $0x730] sm:$0xff] }
 0x430   :  { %3796 = vmatpush3.bf16.msra.mxu0 %v3795_v58  ;;  %3259 = vmatprep.mubr.msk.f32.mxu0 %vm3975_vm10, %v3973_v0  ;;  %v2106_v58 = vld [vmem:[#allocation2 + $0x6a8] sm:$0xff] }
 0x431   :  { %3155 = vmatmul.mubr.f32.vlgmr.msra.gmra.mrb[28].mxu1 %v4458_v29  ;;  %3797 = vmatprep.subr.bf16.mxu0 %v3974_v53  ;;  %v2017_v29 = vld [vmem:[#allocation2 + $0x620] sm:$0xff]  ;;  %v3849_v49 = vpack.c.bf16 %v2106_v58, %v2105_v46  ;;  %v2291_v58 = vld [vmem:[#allocation2 + $0x7c8] sm:$0xff] }
 0x432   :  { %3772 = vmatpush3.bf16.msra.mxu1 %v3771_v50  ;;  %3224 = vmatprep.mubr.msk.f32.mxu1 %vm3975_vm10, %v3973_v0  ;;  %v2107_v50 = vld [vmem:[#allocation2 + $0x6b0] sm:$0xff]  ;;  %v3825_v56 = vpack.c.bf16 %v2018_v48, %v2017_v29  ;;  %v2200_v29 = vld [vmem:[#allocation2 + $0x740] sm:$0xff]  ;;  %v2201_v48 = vld [vmem:[#allocation2 + $0x748] sm:$0xff] }
 0x433   :  { %3773 = vmatprep.subr.bf16.mxu1 %v3974_v53  ;;  %v3852_v62 = vpack.c.bf16 %v2108_v52, %v2107_v50  ;;  %v2292_v50 = vld [vmem:[#allocation2 + $0x7d0] sm:$0xff]  ;;  %v2293_v52 = vld [vmem:[#allocation2 + $0x7d8] sm:$0xff] }
 0x434   :  { %3799 = vmatpush3.bf16.msra.mxu0 %v3798_v57  ;;  %v2019_v57 = vld [vmem:[#allocation2 + $0x630] sm:$0xff] }
 0x435   :  { %3800 = vmatprep.subr.bf16.mxu0 %v3974_v53  ;;  %v3828_v4 = vpack.c.bf16 %v2020_v60, %v2019_v57  ;;  %v2202_v57 = vld [vmem:[#allocation2 + $0x750] sm:$0xff]  ;;  %v2203_v60 = vld [vmem:[#allocation2 + $0x758] sm:$0xff] }
 0x436   :  { %3775 = vmatpush3.bf16.msra.mxu1 %v3774_v2  ;;  %v2109_v2 = vld [vmem:[#allocation2 + $0x6c0] sm:$0xff] }
 0x437   :  { %3776 = vmatprep.subr.bf16.mxu1 %v3974_v53  ;;  %v3855_v10 = vpack.c.bf16 %v2110_v3, %v2109_v2  ;;  %v2294_v2 = vld [vmem:[#allocation2 + $0x7e0] sm:$0xff]  ;;  %v2295_v3 = vld [vmem:[#allocation2 + $0x7e8] sm:$0xff] }
 0x438   :  { %3802 = vmatpush3.bf16.msra.mxu0 %v3801_v6  ;;  %v2021_v6 = vld [vmem:[#allocation2 + $0x640] sm:$0xff] }
 0x439   :  { %3803 = vmatprep.subr.bf16.mxu0 %v3974_v53  ;;  %v3831_v14 = vpack.c.bf16 %v2022_v8, %v2021_v6  ;;  %v3882_v6 = vpack.c.bf16 %v2203_v60, %v2202_v57 }
 0x43a   :  { %3778 = vmatpush3.bf16.msra.mxu1 %v3777_v41  ;;  %v2111_v41 = vld [vmem:[#allocation2 + $0x6d0] sm:$0xff] }
 0x43b   :  { %3779 = vmatprep.subr.bf16.mxu1 %v3974_v53  ;;  %v3858_v21 = vpack.c.bf16 %v2112_v11, %v2111_v41  ;;  %v2205_v41 = vld [vmem:[#allocation2 + $0x768] sm:$0xff] }
 0x43c   :  { %3805 = vmatpush3.bf16.msra.mxu0 %v3804_v44  ;;  %v2023_v44 = vld [vmem:[#allocation2 + $0x650] sm:$0xff] }
 0x43d   :  { %3806 = vmatprep.subr.bf16.mxu0 %v3974_v53  ;;  %v3834_v54 = vpack.c.bf16 %v2024_v15, %v2023_v44 }
 0x43e   :  { %3781 = vmatpush3.bf16.msra.mxu1 %v3780_v16  ;;  %v2113_v16 = vld [vmem:[#allocation2 + $0x6e0] sm:$0xff] }
 0x43f   :  { %3782 = vmatprep.subr.bf16.mxu1 %v3974_v53  ;;  %v3861_v27 = vpack.c.bf16 %v2114_v45, %v2113_v16  ;;  %v2297_v16 = vld [vmem:[#allocation2 + $0x7f8] sm:$0xff] }
 0x440   :  { %3808 = vmatpush3.bf16.msra.mxu0 %v3807_v17  ;;  %v2025_v17 = vld [vmem:[#allocation2 + $0x660] sm:$0xff] }
 0x441   :  { %3809 = vmatprep.subr.bf16.mxu0 %v3974_v53  ;;  %v3837_v19 = vpack.c.bf16 %v2026_v7, %v2025_v17  ;;  %v2207_v17 = vld [vmem:[#allocation2 + $0x778] sm:$0xff] }
 0x442   :  { %3784 = vmatpush3.bf16.msra.mxu1 %v3783_v18  ;;  %v2115_v18 = vld [vmem:[#allocation2 + $0x6f0] sm:$0xff] }
 0x443   :  { %3785 = vmatprep.subr.bf16.mxu1 %v3974_v53  ;;  %v3864_v59 = vpack.c.bf16 %v2116_v38, %v2115_v18  ;;  %v2298_v18 = vrot.slane %v4453_v28, 6  ;;  %v2208_v38 = vrot.slane %v4453_v28, 4 }
 0x444   :  { %3811 = vmatpush3.bf16.msra.mxu0 %v3810_v1  ;;  %v2027_v1 = vld [vmem:[#allocation2 + $0x670] sm:$0xff] }
 0x445   :  { %3812 = vmatprep.subr.bf16.mxu0 %v3974_v53  ;;  %v3840_v25 = vpack.c.bf16 %v2028_v42, %v2027_v1 }
 0x446   :  { %3787 = vmatpush3.bf16.msra.mxu1 %v3786_v23  ;;  %v2282_v23 = vld [vmem:[#allocation2 + $0x780] sm:$0xff] }
 0x447   :  { %3788 = vmatprep.subr.bf16.mxu1 %v3974_v53  ;;  %v3891_v22 = vpack.c.bf16 %v2283_v24, %v2282_v23 }
 0x448   :  { %3814 = vmatpush3.bf16.msra.mxu0 %v3813_v9  ;;  %v2192_v9 = vld [vmem:[#allocation2 + $0x700] sm:$0xff] }
 0x449   :  { %3815 = vmatprep.subr.bf16.mxu0 %v3974_v53 }
 0x44a   :  { %3790 = vmatpush3.bf16.msra.mxu1 %v3789_v63  ;;  %v2118_v63 = vrot.slane %v4453_v28, 2 }
 0x44b   :  { %3791 = vmatprep.subr.bf16.mxu1 %v3974_v53 }
 0x44c   :  { %3817 = vmatpush3.bf16.msra.mxu0 %v3816_v5  ;;  %v3867_v5 = vpack.c.bf16 %v2193_v51, %v2192_v9 }
 0x44d   :  { %3842 = vmatprep.subr.bf16.mxu0 %v3974_v53 }
 0x44e   :  { %3793 = vmatpush3.bf16.msra.mxu1 %v3792_v32  ;;  %v3894_v32 = vpack.c.bf16 %v2285_v26, %v2284_v12 }
 0x44f   :  { %3260 = vmatmul.mubr.f32.vlgmr.msra.gmra.mrb[34].mxu0 %v1939_v20  ;;  %3818 = vmatprep.subr.bf16.mxu1 %v3974_v53  ;;  %v2196_v20 = vld [vmem:[#allocation2 + $0x720] sm:$0xff] }
 0x450   :  { %3844 = vmatpush3.bf16.msra.mxu0 %v3843_v61  ;;  %3329 = vmatprep.mubr.msk.f32.mxu0 %vm3975_vm10, %v3973_v0  ;;  %v3870_v61 = vpack.c.bf16 %v2195_v31, %v2194_v30  ;;  %v3873_v39 = vpack.c.bf16 %v2197_v34, %v2196_v20 }
 0x451   :  { %3225 = vmatmul.mubr.f32.vlgmr.msra.gmra.mrb[30].mxu1 %v1849_v37  ;;  %3845 = vmatprep.subr.bf16.mxu0 %v3974_v53  ;;  %v2289_v37 = vld [vmem:[#allocation2 + $0x7b8] sm:$0xff] }
 0x452   :  { %3820 = vmatpush3.bf16.msra.mxu1 %v3819_v36  ;;  %3294 = vmatprep.mubr.msk.f32.mxu1 %vm3975_vm10, %v3973_v0  ;;  %v2288_v36 = vld [vmem:[#allocation2 + $0x7b0] sm:$0xff] }
 0x453   :  { %3821 = vmatprep.subr.bf16.mxu1 %v3974_v53  ;;  %v3900_v46 = vpack.c.bf16 %v2289_v37, %v2288_v36 }
 0x454   :  { %3847 = vmatpush3.bf16.msra.mxu0 %v3846_v43  ;;  %v2199_v43 = vld [vmem:[#allocation2 + $0x738] sm:$0xff] }
 0x455   :  { %3848 = vmatprep.subr.bf16.mxu0 %v3974_v53 }
 0x456   :  { %3823 = vmatpush3.bf16.msra.mxu1 %v3822_v47  ;;  %v3876_v47 = vpack.c.bf16 %v2199_v43, %v2198_v40 }
 0x457   :  { %3824 = vmatprep.subr.bf16.mxu1 %v3974_v53 }
 0x458   :  { %3850 = vmatpush3.bf16.msra.mxu0 %v3849_v49 }
 0x459   :  { %3851 = vmatprep.subr.bf16.mxu0 %v3974_v53 }
 0x45a   :  { %3826 = vmatpush3.bf16.msra.mxu1 %v3825_v56  ;;  %v3879_v56 = vpack.c.bf16 %v2201_v48, %v2200_v29 }
 0x45b   :  { %3827 = vmatprep.subr.bf16.mxu1 %v3974_v53 }
 0x45c   :  { %3853 = vmatpush3.bf16.msra.mxu0 %v3852_v62  ;;  %v3906_v62 = vpack.c.bf16 %v2293_v52, %v2292_v50 }
 0x45d   :  { %3854 = vmatprep.subr.bf16.mxu0 %v3974_v53 }
 0x45e   :  { %3829 = vmatpush3.bf16.msra.mxu1 %v3828_v4 }
 0x45f   :  { %3830 = vmatprep.subr.bf16.mxu1 %v3974_v53 }
 0x460   :  { %3856 = vmatpush3.bf16.msra.mxu0 %v3855_v10  ;;  %v2204_v10 = vld [vmem:[#allocation2 + $0x760] sm:$0xff] }
 0x461   :  { %3857 = vmatprep.subr.bf16.mxu0 %v3974_v53  ;;  %v3885_v45 = vpack.c.bf16 %v2205_v41, %v2204_v10 }
 0x462   :  { %3832 = vmatpush3.bf16.msra.mxu1 %v3831_v14  ;;  %v3909_v14 = vpack.c.bf16 %v2295_v3, %v2294_v2 }
 0x463   :  { %3833 = vmatprep.subr.bf16.mxu1 %v3974_v53 }
 0x464   :  { %3859 = vmatpush3.bf16.msra.mxu0 %v3858_v21  ;;  %v2296_v21 = vld [vmem:[#allocation2 + $0x7f0] sm:$0xff] }
 0x465   :  { %3860 = vmatprep.subr.bf16.mxu0 %v3974_v53  ;;  %v3912_v7 = vpack.c.bf16 %v2297_v16, %v2296_v21 }
 0x466   :  { %3835 = vmatpush3.bf16.msra.mxu1 %v3834_v54  ;;  %v2206_v54 = vld [vmem:[#allocation2 + $0x770] sm:$0xff] }
 0x467   :  { %3836 = vmatprep.subr.bf16.mxu1 %v3974_v53 }
 0x468   :  { %3862 = vmatpush3.bf16.msra.mxu0 %v3861_v27  ;;  %v3888_v27 = vpack.c.bf16 %v2207_v17, %v2206_v54 }
 0x469   :  { %3863 = vmatprep.subr.bf16.mxu0 %v3974_v53 }
 0x46a   :  { %3838 = vmatpush3.bf16.msra.mxu1 %v3837_v19 }
 0x46b   :  { %3839 = vmatprep.subr.bf16.mxu1 %v3974_v53 }
 0x46c   :  { %3865 = vmatpush3.bf16.msra.mxu0 %v3864_v59 }
 0x46d   :  { %3890 = vmatprep.subr.bf16.mxu0 %v3974_v53 }
 0x46e   :  { %3841 = vmatpush3.bf16.msra.mxu1 %v3840_v25 }
 0x46f   :  { %3330 = vmatmul.mubr.f32.vlgmr.msra.gmra.mrb[36].mxu0 %v2118_v63  ;;  %3866 = vmatprep.subr.bf16.mxu1 %v3974_v53 }
 0x470   :  { %3892 = vmatpush3.bf16.msra.mxu0 %v3891_v22  ;;  %3399 = vmatprep.mubr.msk.f32.mxu0 %vm3975_vm10, %v3973_v0 }
 0x471   :  { %3295 = vmatmul.mubr.f32.vlgmr.msra.gmra.mrb[32].mxu1 %v4453_v28  ;;  %3893 = vmatprep.subr.bf16.mxu0 %v3974_v53 }
 0x472   :  { %3868 = vmatpush3.bf16.msra.mxu1 %v3867_v5  ;;  %3364 = vmatprep.mubr.msk.f32.mxu1 %vm3975_vm10, %v3973_v0  ;;  %v2290_v0 = vld [vmem:[#allocation2 + $0x7c0] sm:$0xff] }
 0x473   :  { %3869 = vmatprep.subr.bf16.mxu1 %v3974_v53  ;;  %v3903_v49 = vpack.c.bf16 %v2291_v58, %v2290_v0 }
 0x474   :  { %3895 = vmatpush3.bf16.msra.mxu0 %v3894_v32 }
 0x475   :  { %3896 = vmatprep.subr.bf16.mxu0 %v3974_v53 }
 0x476   :  { %3871 = vmatpush3.bf16.msra.mxu1 %v3870_v61 }
 0x477   :  { %3872 = vmatprep.subr.bf16.mxu1 %v3974_v53 }
 0x478   :  { %3898 = vmatpush3.bf16.msra.mxu0 %v3897_v13 }
 0x479   :  { %3899 = vmatprep.subr.bf16.mxu0 %v3974_v53 }
 0x47a   :  { %3874 = vmatpush3.bf16.msra.mxu1 %v3873_v39 }
 0x47b   :  { %3875 = vmatprep.subr.bf16.mxu1 %v3974_v53 }
 0x47c   :  { %3901 = vmatpush3.bf16.msra.mxu0 %v3900_v46 }
 0x47d   :  { %3902 = vmatprep.subr.bf16.mxu0 %v3974_v53 }
 0x47e   :  { %3877 = vmatpush3.bf16.msra.mxu1 %v3876_v47 }
 0x47f   :  { %3878 = vmatprep.subr.bf16.mxu1 %v3974_v53 }
 0x480   :  { %3904 = vmatpush3.bf16.msra.mxu0 %v3903_v49  ;;  %v2373_v49 = vsub.s32 3, %v4145_v55 }
 0x481   :  { %3905 = vmatprep.subr.bf16.mxu0 %v3974_v53 }
 0x482   :  { %3880 = vmatpush3.bf16.msra.mxu1 %v3879_v56  ;;  %v1110_v4 = vpop.f32.mrb[24].mxu0 }
 0x483   :  { %v2911_v8 = vpop.f32.mrb[25].mxu0  ;;  %3881 = vmatprep.subr.bf16.mxu1 %v3974_v53 }
 0x484   :  { %3907 = vmatpush3.bf16.msra.mxu0 %v3906_v62  ;;  %v1040_v11 = vpop.f32.mrb[20].mxu1  ;;  %v3921_v62 = vld [vmem:[%s4630_s4] sm:$0xf] }
 0x485   :  { %v1111_v44 = vadd.f32 %v1110_v4, %v1040_v11  ;;  %v2876_v15 = vpop.f32.mrb[21].mxu1  ;;  %3908 = vmatprep.subr.bf16.mxu0 %v3974_v53  ;;  %v2374_v2 = vrot.slane %v3921_v62, %v2373_v49 }
 0x486   :  { %3883 = vmatpush3.bf16.msra.mxu1 %v3882_v6 }
 0x487   :  { %3884 = vmatprep.subr.bf16.mxu1 %v3974_v53 }
 0x488   :  { %3910 = vmatpush3.bf16.msra.mxu0 %v3909_v14 }
 0x489   :  { %3911 = vmatprep.subr.bf16.mxu0 %v3974_v53 }
 0x48a   :  { %3886 = vmatpush3.bf16.msra.mxu1 %v3885_v45 }
 0x48b   :  { %3887 = vmatprep.subr.bf16.mxu1 %v3974_v53 }
 0x48c   :  { %3913 = vmatpush3.bf16.msra.mxu0 %v3912_v7 }
 0x48e   :  { %3889 = vmatpush3.bf16.msra.mxu1 %v3888_v27 }
 0x48f   :  { %3400 = vmatmul.mubr.f32.vlgmr.msra.gmra.mrb[38].mxu0 %v2298_v18 }
 0x491   :  { %3365 = vmatmul.mubr.f32.vlgmr.msra.gmra.mrb[34].mxu1 %v2208_v38 }
 0x4a2   :  { %v1289_v19 = vpop.f32.mrb[26].mxu0 }
 0x4a3   :  { %v2981_v1 = vpop.f32.mrb[27].mxu0 }
 0x4a4   :  { %v1199_v42 = vpop.f32.mrb[22].mxu1 }
 0x4a5   :  { %v1203_v59 = vadd.f32 %v1199_v42, %v1111_v44  ;;  %v2946_v23 = vpop.f32.mrb[23].mxu1 }
 0x4a7   :  { %v1293_v24 = vadd.f32 %v1289_v19, %v1203_v59 }
 0x4c2   :  { %v1468_v25 = vpop.f32.mrb[28].mxu0 }
 0x4c3   :  { %v3051_v9 = vpop.f32.mrb[29].mxu0 }
 0x4c4   :  { %v1377_v51 = vpop.f32.mrb[24].mxu1 }
 0x4c5   :  { %v1381_v22 = vadd.f32 %v1377_v51, %v1293_v24  ;;  %v3016_v63 = vpop.f32.mrb[25].mxu1 }
 0x4c7   :  { %v1472_v53 = vadd.f32 %v1468_v25, %v1381_v22 }
 0x4e2   :  { %v1648_v12 = vpop.f32.mrb[30].mxu0 }
 0x4e3   :  { %v3121_v26 = vpop.f32.mrb[31].mxu0 }
 0x4e4   :  { %v1558_v5 = vpop.f32.mrb[26].mxu1 }
 0x4e5   :  { %v1562_v30 = vadd.f32 %v1558_v5, %v1472_v53  ;;  %v3086_v31 = vpop.f32.mrb[27].mxu1 }
 0x4e7   :  { %v1652_v32 = vadd.f32 %v1648_v12, %v1562_v30 }
 0x502   :  { %v1827_v28 = vpop.f32.mrb[32].mxu0 }
 0x503   :  { %v3191_v35 = vpop.f32.mrb[33].mxu0 }
 0x504   :  { %v1736_v33 = vpop.f32.mrb[28].mxu1 }
 0x505   :  { %v1740_v61 = vadd.f32 %v1736_v33, %v1652_v32  ;;  %v3156_v20 = vpop.f32.mrb[29].mxu1 }
 0x507   :  { %v1831_v34 = vadd.f32 %v1827_v28, %v1740_v61 }
 0x522   :  { %v2007_v13 = vpop.f32.mrb[34].mxu0 }
 0x523   :  { %v3261_v36 = vpop.f32.mrb[35].mxu0 }
 0x524   :  { %v1917_v37 = vpop.f32.mrb[30].mxu1 }
 0x525   :  { %v1921_v39 = vadd.f32 %v1917_v37, %v1831_v34  ;;  %v3226_v40 = vpop.f32.mrb[31].mxu1 }
 0x527   :  { %v2011_v43 = vadd.f32 %v2007_v13, %v1921_v39 }
 0x542   :  { %v2186_v46 = vpop.f32.mrb[36].mxu0 }
 0x543   :  { %v3331_v0 = vpop.f32.mrb[37].mxu0 }
 0x544   :  { %v2095_v58 = vpop.f32.mrb[32].mxu1 }
 0x545   :  { %v2099_v47 = vadd.f32 %v2095_v58, %v2011_v43  ;;  %v3296_v29 = vpop.f32.mrb[33].mxu1 }
 0x547   :  { %v2190_v48 = vadd.f32 %v2186_v46, %v2099_v47 }
 0x562   :  { %v2366_v50 = vpop.f32.mrb[38].mxu0 }
 0x563   :  { %v3401_v52 = vpop.f32.mrb[39].mxu0 }
 0x564   :  { %v2276_v56 = vpop.f32.mrb[34].mxu1 }
 0x565   :  { %v2280_v57 = vadd.f32 %v2276_v56, %v2190_v48  ;;  %v3366_v60 = vpop.f32.mrb[35].mxu1 }
 0x567   :  { %v2370_v3 = vadd.f32 %v2366_v50, %v2280_v57 }
 0x569   :  { %v2375_v4 = vadd.f32 %v2374_v2, %v2370_v3 }
 0x56b   :  { %2376 = vst [vmem:[#allocation5] sm:$0x3] %v2375_v4 }
 0x56c   :  { %3955 = shalt.err (!%p3952_p12)
}
 0x56d   :  { %s3956_s18 = scalar_lea.hbm %s4631_s5, 32 }
 0x56e   :  { %p3957_p13 = scmp.ne.s32.totalorder %s4631_s5, %s3956_s18  ;;  %p3960_p0 = scmp.lt.u32.totalorder %s3956_s18, %s4631_s5 }
 0x570   :  { %p3962_p1 = pnand %p3960_p0, %p3957_p13 }
 0x572   :  { %3965 = shalt.err (!%p3962_p1)
}
 0x573   :  { %2386 = dma.vmem_to_hbm [thread:$0]  %s2384_s14, 32, %s4631_s5, [#allocation4]  }
 0x574   :  { %3968 = dma.done.wait [#allocation4], 32  }
 0x575   :  { %3969 = vsyncadd [#allocation4], 4294967264 }
 0x576   :  { %2390 = vsyncpa [#allocation3], 1 }
 0x577   :  { %2391 = vsyncpa [#allocation4], 1 }

</bundles_post_ra>
